<compile_context>
chip_gen: v6e
topology: v6e:2x2x1
jax: 0.10.0
libtpu: 0.0.40
codegen_flags: <defaults>
</compile_context>

<pallas_src>
import jax
import jax.numpy as jnp
from jax.experimental import pallas as pl
from jax.experimental.pallas import tpu as pltpu

VMEM = pl.BlockSpec(memory_space=pltpu.MemorySpace.VMEM)


# ---------------------------------------------------------------------------
# In-kernel building blocks (operate on VMEM-resident values)
# ---------------------------------------------------------------------------
def _mlp_block(x, w1, vec, w2, b2):
    """Linear -> BatchNorm1d (batch stats) -> ReLU -> Linear.

    vec rows: 0 = b1, 1 = gamma, 2 = beta (one packed (3, H) slab per MLP).
    """
    h = jnp.dot(x, w1, preferred_element_type=jnp.float32) + vec[0:1, :]
    mu = jnp.mean(h, axis=0, keepdims=True)
    var = jnp.mean((h - mu) ** 2, axis=0, keepdims=True)       # biased var (BN)
    hn = (h - mu) * jax.lax.rsqrt(var + 1e-5) * vec[1:2, :] + vec[2:3, :]
    hr = jnp.maximum(hn, 0.0)
    return jnp.dot(hr, w2, preferred_element_type=jnp.float32) + b2


def _lstm_gates(z, c_prev, H):
    """Gate math with pre-activations z in fused layout; gate order (i, f, o, g).

    One sigmoid over the contiguous leading 3H lanes, one tanh over the last H.
    """
    s = jax.nn.sigmoid(z[:, : 3 * H])
    g = jnp.tanh(z[:, 3 * H:])
    c_new = s[:, H:2 * H] * c_prev + s[:, :H] * g               # f*c + i*g
    h_new = s[:, 2 * H:3 * H] * jnp.tanh(c_new)                 # o*tanh(c)
    return h_new, c_new


# ---------------------------------------------------------------------------
# Single fused kernel for the entire Func.forward
# ---------------------------------------------------------------------------
def _fused_func_kernel(
    x_ref, c_ref,
    iw1_ref, iw2_ref, sw1_ref, sw2_ref, ow1_ref, ow2_ref,      # MLP matrices
    mvec_ref, mb2_ref,                                          # packed MLP vectors
    wih1_ref, whh1_ref, w2cat_ref, blstm_ref,                   # 2-layer LSTM
    mwx_ref, mwc_ref, mb_ref,                                   # main (cond.) layers
    dy_ref, step_ref,
):
    B = c_ref.shape[0]
    T = x_ref.shape[0] // B
    H = iw2_ref.shape[1]
    style_dim = ow2_ref.shape[1]
    n_main = mwx_ref.shape[0]

    vecs = mvec_ref[...]                     # (9, H): 3 rows per MLP (b1,gamma,beta)
    b2s = mb2_ref[...]                       # (3, H): per-MLP b2, lane-padded

    # ---- input MLP over all T*B rows (BatchNorm over the full T*B batch) ----
    y = _mlp_block(x_ref[...], iw1_ref[...], vecs[0:3], iw2_ref[...],
                   b2s[0:1, :])                                 # (T*B, H)

    # ---- 2-layer LSTM ------------------------------------------------------
    # Layer-1 input projection hoisted out of the recurrence: one dense matmul.
    blstm = blstm_ref[...]                                      # (2, 4H)
    xz1 = (jnp.dot(y, wih1_ref[...], preferred_element_type=jnp.float32)
           + blstm[0:1, :])                                     # (T*B, 4H)
    whh1 = whh1_ref[...]                                        # (H, 4H)
    w2cat = w2cat_ref[...]                                      # (2H, 4H) = [wih2; whh2]
    bl2 = blstm[1:2, :]

    zeros = jnp.zeros((B, H), jnp.float32)
    h1, c1, h2, c2 = zeros, zeros, zeros, zeros
    for t in range(T):                       # T is small & static -> full unroll
        z1 = xz1[t * B:(t + 1) * B, :] + jnp.dot(
            h1, whh1, preferred_element_type=jnp.float32)
        h1, c1 = _lstm_gates(z1, c1, H)
        z2 = jnp.dot(jnp.concatenate([h1, h2], axis=1), w2cat,
                     preferred_element_type=jnp.float32) + bl2   # one MXU push
        h2, c2 = _lstm_gates(z2, c2, H)
    y0 = h2                                  # == rnn(y)[0][-1]

    # ---- conditional main layers: relu(y0 @ Wx[k] + (c @ Wc + b)[k]) --------
    # c-projection + biases hoisted: one (B, c_dim)@(c_dim, n_main*H) matmul.
    c_proj = (jnp.dot(c_ref[...], mwc_ref[...],
                      preferred_element_type=jnp.float32) + mb_ref[...])
    for k in range(n_main):
        y0 = jnp.maximum(
            jnp.dot(y0, mwx_ref[k], preferred_element_type=jnp.float32)
            + c_proj[:, k * H:(k + 1) * H],
            0.0,
        )

    # ---- heads (+ sigmoid, L2-normalize) ------------------------------------
    step = jax.nn.sigmoid(
        _mlp_block(y0, sw1_ref[...], vecs[3:6], sw2_ref[...],
                   b2s[1:2, :1]))                               # (B, 1)
    out = _mlp_block(y0, ow1_ref[...], vecs[6:9], ow2_ref[...],
                     b2s[2:3, :style_dim])                      # (B, style_dim)
    sumsq = jnp.sum(out * out, axis=-1, keepdims=True)
    dy = out * jax.lax.rsqrt(jnp.maximum(sumsq, 1e-24))         # F.normalize (eps=1e-12)

    dy_ref[...] = dy
    step_ref[...] = step


# ---------------------------------------------------------------------------
# Parameter construction (deterministic, synthetic) in packed kernel layout
# ---------------------------------------------------------------------------
def init_params(key, style_dim, hid_c, c_dim, n_styles, n_layer):
    keys = iter(jax.random.split(key, 64))
    H = hid_c
    n_main = 1 + max(0, n_layer - 1)

    def rnd(shape, scale=0.1):
        return jax.random.normal(next(keys), shape, jnp.float32) * scale

    def mlp_vec_slab():
        # rows: b1, gamma, beta
        return jnp.concatenate([rnd((1, H), 0.01),
                                jnp.ones((1, H), jnp.float32),
                                jnp.zeros((1, H), jnp.float32)], axis=0)

    def padded_b2(out_c):
        return jnp.pad(rnd((1, out_c), 0.01), ((0, 0), (0, H - out_c)))

    # LSTM weights, gate-fused on the lane axis in order (i, f, o, g);
    # b_ih + b_hh pre-summed (equivalent for the forward pass).
    wih1 = rnd((H, 4 * H)); whh1 = rnd((H, 4 * H))
    wih2 = rnd((H, 4 * H)); whh2 = rnd((H, 4 * H))
    bl1 = rnd((1, 4 * H), 0.01); bl2 = rnd((1, 4 * H), 0.01)

    return {
        "iw1": rnd((style_dim * n_styles, H)),
        "iw2": rnd((H, H)),
        "sw1": rnd((H, H)),
        "sw2": rnd((H, 1)),
        "ow1": rnd((H, H)),
        "ow2": rnd((H, style_dim)),
        "mlp_vecs": jnp.concatenate(
            [mlp_vec_slab(), mlp_vec_slab(), mlp_vec_slab()], axis=0),   # (9, H)
        "mlp_b2": jnp.concatenate(
            [padded_b2(H), padded_b2(1), padded_b2(style_dim)], axis=0),  # (3, H)
        "wih1": wih1,
        "whh1": whh1,
        "w2cat": jnp.concatenate([wih2, whh2], axis=0),                  # (2H, 4H)
        "blstm": jnp.concatenate([bl1, bl2], axis=0),                    # (2, 4H)
        "mwx": rnd((n_main, H, H)),
        "mwc_all": rnd((c_dim, n_main * H)),
        "mb_all": rnd((1, n_main * H), 0.01),
    }


# ---------------------------------------------------------------------------
# Full forward (matches Func.forward) — one pallas_call
# ---------------------------------------------------------------------------
@jax.jit
def func_forward(params, trajectory, c):
    # trajectory: (T, B, n_styles, style_dim) == torch.stack(list_of_tensors)
    T, B = trajectory.shape[0], trajectory.shape[1]
    x = trajectory.reshape(T * B, -1)          # .flatten(-2).view(-1, D)
    style_dim = params["ow2"].shape[1]

    args = [
        x, c,
        params["iw1"], params["iw2"], params["sw1"], params["sw2"],
        params["ow1"], params["ow2"], params["mlp_vecs"], params["mlp_b2"],
        params["wih1"], params["whh1"], params["w2cat"], params["blstm"],
        params["mwx"], params["mwc_all"], params["mb_all"],
    ]

    dy, step_size = pl.pallas_call(
        _fused_func_kernel,
        out_shape=(
            jax.ShapeDtypeStruct((B, style_dim), jnp.float32),
            jax.ShapeDtypeStruct((B, 1), jnp.float32),
        ),
        in_specs=[VMEM] * len(args),
        out_specs=(VMEM, VMEM),
    )(*args)

    return dy[:, None, :], step_size           # .unsqueeze(1)


if __name__ == "__main__":
    # Small, module-consistent shapes.
    T, B = 6, 4
    n_styles, style_dim = 3, 4
    hid_c, c_dim, n_layer = 32, 8, 2

    key = jax.random.PRNGKey(0)
    k_param, k_traj, k_c = jax.random.split(key, 3)

    params = init_params(k_param, style_dim, hid_c, c_dim, n_styles, n_layer)
    trajectory = jax.random.normal(k_traj, (T, B, n_styles, style_dim), jnp.float32)
    c = jax.random.normal(k_c, (B, c_dim), jnp.float32)

    dy, step_size = func_forward(params, trajectory, c)
    jax.block_until_ready((dy, step_size))

    assert dy.shape == (B, 1, style_dim), dy.shape
    assert step_size.shape == (B, 1), step_size.shape
    assert bool(jnp.all(jnp.isfinite(dy))) and bool(jnp.all(jnp.isfinite(step_size)))
    # dy rows must be unit-norm (F.normalize semantics)
    norms = jnp.linalg.norm(dy[:, 0, :], axis=-1)
    assert bool(jnp.all(jnp.abs(norms - 1.0) < 1e-4)), norms
    # step_size must be a valid sigmoid output
    assert bool(jnp.all((step_size > 0.0) & (step_size < 1.0)))
    print("KERNEL_OK")
</pallas_src>

<mosaic_0001>
module attributes {stable_mosaic.version = 11 : i64} {
  func.func @_fused_func_kernel(%arg0: memref<24x12xf32, #tpu.memory_space<vmem>>, %arg1: memref<4x8xf32, #tpu.memory_space<vmem>>, %arg2: memref<12x32xf32, #tpu.memory_space<vmem>>, %arg3: memref<32x32xf32, #tpu.memory_space<vmem>>, %arg4: memref<32x32xf32, #tpu.memory_space<vmem>>, %arg5: memref<32x1xf32, #tpu.memory_space<vmem>>, %arg6: memref<32x32xf32, #tpu.memory_space<vmem>>, %arg7: memref<32x4xf32, #tpu.memory_space<vmem>>, %arg8: memref<9x32xf32, #tpu.memory_space<vmem>>, %arg9: memref<3x32xf32, #tpu.memory_space<vmem>>, %arg10: memref<32x128xf32, #tpu.memory_space<vmem>>, %arg11: memref<32x128xf32, #tpu.memory_space<vmem>>, %arg12: memref<64x128xf32, #tpu.memory_space<vmem>>, %arg13: memref<2x128xf32, #tpu.memory_space<vmem>>, %arg14: memref<2x32x32xf32, #tpu.memory_space<vmem>>, %arg15: memref<8x64xf32, #tpu.memory_space<vmem>>, %arg16: memref<1x64xf32, #tpu.memory_space<vmem>>, %arg17: memref<4x4xf32, #tpu.memory_space<vmem>>, %arg18: memref<4x1xf32, #tpu.memory_space<vmem>>) attributes {dimension_semantics = [], scalar_prefetch = 0 : i64, scratch_operands = 0 : i64, tpu.core_type = #tpu.core_type<tc>} {
    %c0 = arith.constant 0 : index
    %c0_0 = arith.constant 0 : index
    %0 = vector.load %arg8[%c0, %c0_0] : memref<9x32xf32, #tpu.memory_space<vmem>>, vector<9x32xf32>
    %c0_1 = arith.constant 0 : index
    %c0_2 = arith.constant 0 : index
    %1 = vector.load %arg9[%c0_1, %c0_2] : memref<3x32xf32, #tpu.memory_space<vmem>>, vector<3x32xf32>
    %c0_3 = arith.constant 0 : index
    %c0_4 = arith.constant 0 : index
    %2 = vector.load %arg0[%c0_3, %c0_4] : memref<24x12xf32, #tpu.memory_space<vmem>>, vector<24x12xf32>
    %c0_5 = arith.constant 0 : index
    %c0_6 = arith.constant 0 : index
    %3 = vector.load %arg2[%c0_5, %c0_6] : memref<12x32xf32, #tpu.memory_space<vmem>>, vector<12x32xf32>
    %4 = vector.extract_strided_slice %0 {offsets = [0, 0], sizes = [3, 32], strides = [1, 1]} : vector<9x32xf32> to vector<3x32xf32>
    %c0_7 = arith.constant 0 : index
    %c0_8 = arith.constant 0 : index
    %5 = vector.load %arg3[%c0_7, %c0_8] : memref<32x32xf32, #tpu.memory_space<vmem>>, vector<32x32xf32>
    %6 = vector.extract_strided_slice %1 {offsets = [0, 0], sizes = [1, 32], strides = [1, 1]} : vector<3x32xf32> to vector<1x32xf32>
    %cst = arith.constant dense<0.000000e+00> : vector<24x32xf32>
    %7 = tpu.matmul %2, %3, %cst {dimension_numbers = #tpu.dot_dimension_numbers<[1], [0], [0], [1], [0, 0, 1, 1], [], []>} : vector<24x12xf32>, vector<12x32xf32>, vector<24x32xf32> -> vector<24x32xf32>
    %8 = vector.extract_strided_slice %4 {offsets = [0, 0], sizes = [1, 32], strides = [1, 1]} : vector<3x32xf32> to vector<1x32xf32>
    %9 = vector.broadcast %8 : vector<1x32xf32> to vector<24x32xf32>
    %10 = arith.addf %7, %9 : vector<24x32xf32>
    %cst_9 = arith.constant dense<0.000000e+00> : vector<32xf32>
    %11 = vector.multi_reduction <add>, %10, %cst_9 [0] : vector<24x32xf32> to vector<32xf32>
    %12 = vector.shape_cast %11 : vector<32xf32> to vector<1x32xf32>
    %cst_10 = arith.constant 2.400000e+01 : f32
    %13 = vector.broadcast %cst_10 : f32 to vector<1x32xf32>
    %14 = arith.divf %12, %13 : vector<1x32xf32>
    %15 = vector.broadcast %14 : vector<1x32xf32> to vector<24x32xf32>
    %16 = arith.subf %10, %15 : vector<24x32xf32>
    %17 = arith.mulf %16, %16 : vector<24x32xf32>
    %cst_11 = arith.constant dense<0.000000e+00> : vector<32xf32>
    %18 = vector.multi_reduction <add>, %17, %cst_11 [0] : vector<24x32xf32> to vector<32xf32>
    %19 = vector.shape_cast %18 : vector<32xf32> to vector<1x32xf32>
    %cst_12 = arith.constant 2.400000e+01 : f32
    %20 = vector.broadcast %cst_12 : f32 to vector<1x32xf32>
    %21 = arith.divf %19, %20 : vector<1x32xf32>
    %22 = vector.broadcast %14 : vector<1x32xf32> to vector<24x32xf32>
    %23 = arith.subf %10, %22 : vector<24x32xf32>
    %cst_13 = arith.constant 9.99999974E-6 : f32
    %24 = vector.broadcast %cst_13 : f32 to vector<1x32xf32>
    %25 = arith.addf %21, %24 : vector<1x32xf32>
    %26 = math.rsqrt %25 : vector<1x32xf32>
    %27 = vector.broadcast %26 : vector<1x32xf32> to vector<24x32xf32>
    %28 = arith.mulf %23, %27 : vector<24x32xf32>
    %29 = vector.extract_strided_slice %4 {offsets = [1, 0], sizes = [1, 32], strides = [1, 1]} : vector<3x32xf32> to vector<1x32xf32>
    %30 = vector.broadcast %29 : vector<1x32xf32> to vector<24x32xf32>
    %31 = arith.mulf %28, %30 : vector<24x32xf32>
    %32 = vector.extract_strided_slice %4 {offsets = [2, 0], sizes = [1, 32], strides = [1, 1]} : vector<3x32xf32> to vector<1x32xf32>
    %33 = vector.broadcast %32 : vector<1x32xf32> to vector<24x32xf32>
    %34 = arith.addf %31, %33 : vector<24x32xf32>
    %cst_14 = arith.constant 0.000000e+00 : f32
    %35 = vector.broadcast %cst_14 : f32 to vector<24x32xf32>
    %36 = arith.maximumf %34, %35 : vector<24x32xf32>
    %cst_15 = arith.constant dense<0.000000e+00> : vector<24x32xf32>
    %37 = tpu.matmul %36, %5, %cst_15 {dimension_numbers = #tpu.dot_dimension_numbers<[1], [0], [0], [1], [0, 0, 1, 1], [], []>} : vector<24x32xf32>, vector<32x32xf32>, vector<24x32xf32> -> vector<24x32xf32>
    %38 = vector.broadcast %6 : vector<1x32xf32> to vector<24x32xf32>
    %39 = arith.addf %37, %38 : vector<24x32xf32>
    %c0_16 = arith.constant 0 : index
    %c0_17 = arith.constant 0 : index
    %40 = vector.load %arg13[%c0_16, %c0_17] : memref<2x128xf32, #tpu.memory_space<vmem>>, vector<2x128xf32>
    %c0_18 = arith.constant 0 : index
    %c0_19 = arith.constant 0 : index
    %41 = vector.load %arg10[%c0_18, %c0_19] : memref<32x128xf32, #tpu.memory_space<vmem>>, vector<32x128xf32>
    %cst_20 = arith.constant dense<0.000000e+00> : vector<24x128xf32>
    %42 = tpu.matmul %39, %41, %cst_20 {dimension_numbers = #tpu.dot_dimension_numbers<[1], [0], [0], [1], [0, 0, 1, 1], [], []>} : vector<24x32xf32>, vector<32x128xf32>, vector<24x128xf32> -> vector<24x128xf32>
    %43 = vector.extract_strided_slice %40 {offsets = [0, 0], sizes = [1, 128], strides = [1, 1]} : vector<2x128xf32> to vector<1x128xf32>
    %44 = vector.broadcast %43 : vector<1x128xf32> to vector<24x128xf32>
    %45 = arith.addf %42, %44 : vector<24x128xf32>
    %c0_21 = arith.constant 0 : index
    %c0_22 = arith.constant 0 : index
    %46 = vector.load %arg11[%c0_21, %c0_22] : memref<32x128xf32, #tpu.memory_space<vmem>>, vector<32x128xf32>
    %c0_23 = arith.constant 0 : index
    %c0_24 = arith.constant 0 : index
    %47 = vector.load %arg12[%c0_23, %c0_24] : memref<64x128xf32, #tpu.memory_space<vmem>>, vector<64x128xf32>
    %48 = vector.extract_strided_slice %40 {offsets = [1, 0], sizes = [1, 128], strides = [1, 1]} : vector<2x128xf32> to vector<1x128xf32>
    %cst_25 = arith.constant 0.000000e+00 : f32
    %49 = vector.broadcast %cst_25 : f32 to vector<4x32xf32>
    %50 = vector.extract_strided_slice %45 {offsets = [0, 0], sizes = [4, 128], strides = [1, 1]} : vector<24x128xf32> to vector<4x128xf32>
    %cst_26 = arith.constant dense<0.000000e+00> : vector<4x128xf32>
    %51 = tpu.matmul %49, %46, %cst_26 {dimension_numbers = #tpu.dot_dimension_numbers<[1], [0], [0], [1], [0, 0, 1, 1], [], []>} : vector<4x32xf32>, vector<32x128xf32>, vector<4x128xf32> -> vector<4x128xf32>
    %52 = arith.addf %50, %51 : vector<4x128xf32>
    %53 = vector.extract_strided_slice %52 {offsets = [0, 0], sizes = [4, 96], strides = [1, 1]} : vector<4x128xf32> to vector<4x96xf32>
    %54 = arith.negf %53 : vector<4x96xf32>
    %55 = math.exp %54 : vector<4x96xf32>
    %cst_27 = arith.constant 1.000000e+00 : f32
    %56 = vector.broadcast %cst_27 : f32 to vector<4x96xf32>
    %57 = arith.addf %56, %55 : vector<4x96xf32>
    %58 = arith.divf %56, %57 : vector<4x96xf32>
    %59 = vector.extract_strided_slice %52 {offsets = [0, 96], sizes = [4, 32], strides = [1, 1]} : vector<4x128xf32> to vector<4x32xf32>
    %60 = math.tanh %59 : vector<4x32xf32>
    %61 = vector.extract_strided_slice %58 {offsets = [0, 32], sizes = [4, 32], strides = [1, 1]} : vector<4x96xf32> to vector<4x32xf32>
    %62 = arith.mulf %61, %49 : vector<4x32xf32>
    %63 = vector.extract_strided_slice %58 {offsets = [0, 0], sizes = [4, 32], strides = [1, 1]} : vector<4x96xf32> to vector<4x32xf32>
    %64 = arith.mulf %63, %60 : vector<4x32xf32>
    %65 = arith.addf %62, %64 : vector<4x32xf32>
    %66 = vector.extract_strided_slice %58 {offsets = [0, 64], sizes = [4, 32], strides = [1, 1]} : vector<4x96xf32> to vector<4x32xf32>
    %67 = math.tanh %65 : vector<4x32xf32>
    %68 = arith.mulf %66, %67 : vector<4x32xf32>
    %69 = tpu.concatenate %68, %49 in 1 : vector<4x32xf32>, vector<4x32xf32> -> vector<4x64xf32>
    %cst_28 = arith.constant dense<0.000000e+00> : vector<4x128xf32>
    %70 = tpu.matmul %69, %47, %cst_28 {dimension_numbers = #tpu.dot_dimension_numbers<[1], [0], [0], [1], [0, 0, 1, 1], [], []>} : vector<4x64xf32>, vector<64x128xf32>, vector<4x128xf32> -> vector<4x128xf32>
    %71 = vector.broadcast %48 : vector<1x128xf32> to vector<4x128xf32>
    %72 = arith.addf %70, %71 : vector<4x128xf32>
    %73 = vector.extract_strided_slice %72 {offsets = [0, 0], sizes = [4, 96], strides = [1, 1]} : vector<4x128xf32> to vector<4x96xf32>
    %74 = arith.negf %73 : vector<4x96xf32>
    %75 = math.exp %74 : vector<4x96xf32>
    %cst_29 = arith.constant 1.000000e+00 : f32
    %76 = vector.broadcast %cst_29 : f32 to vector<4x96xf32>
    %77 = arith.addf %76, %75 : vector<4x96xf32>
    %78 = arith.divf %76, %77 : vector<4x96xf32>
    %79 = vector.extract_strided_slice %72 {offsets = [0, 96], sizes = [4, 32], strides = [1, 1]} : vector<4x128xf32> to vector<4x32xf32>
    %80 = math.tanh %79 : vector<4x32xf32>
    %81 = vector.extract_strided_slice %78 {offsets = [0, 32], sizes = [4, 32], strides = [1, 1]} : vector<4x96xf32> to vector<4x32xf32>
    %82 = arith.mulf %81, %49 : vector<4x32xf32>
    %83 = vector.extract_strided_slice %78 {offsets = [0, 0], sizes = [4, 32], strides = [1, 1]} : vector<4x96xf32> to vector<4x32xf32>
    %84 = arith.mulf %83, %80 : vector<4x32xf32>
    %85 = arith.addf %82, %84 : vector<4x32xf32>
    %86 = vector.extract_strided_slice %78 {offsets = [0, 64], sizes = [4, 32], strides = [1, 1]} : vector<4x96xf32> to vector<4x32xf32>
    %87 = math.tanh %85 : vector<4x32xf32>
    %88 = arith.mulf %86, %87 : vector<4x32xf32>
    %89 = vector.extract_strided_slice %45 {offsets = [4, 0], sizes = [4, 128], strides = [1, 1]} : vector<24x128xf32> to vector<4x128xf32>
    %cst_30 = arith.constant dense<0.000000e+00> : vector<4x128xf32>
    %90 = tpu.matmul %68, %46, %cst_30 {dimension_numbers = #tpu.dot_dimension_numbers<[1], [0], [0], [1], [0, 0, 1, 1], [], []>} : vector<4x32xf32>, vector<32x128xf32>, vector<4x128xf32> -> vector<4x128xf32>
    %91 = arith.addf %89, %90 : vector<4x128xf32>
    %92 = vector.extract_strided_slice %91 {offsets = [0, 0], sizes = [4, 96], strides = [1, 1]} : vector<4x128xf32> to vector<4x96xf32>
    %93 = arith.negf %92 : vector<4x96xf32>
    %94 = math.exp %93 : vector<4x96xf32>
    %cst_31 = arith.constant 1.000000e+00 : f32
    %95 = vector.broadcast %cst_31 : f32 to vector<4x96xf32>
    %96 = arith.addf %95, %94 : vector<4x96xf32>
    %97 = arith.divf %95, %96 : vector<4x96xf32>
    %98 = vector.extract_strided_slice %91 {offsets = [0, 96], sizes = [4, 32], strides = [1, 1]} : vector<4x128xf32> to vector<4x32xf32>
    %99 = math.tanh %98 : vector<4x32xf32>
    %100 = vector.extract_strided_slice %97 {offsets = [0, 32], sizes = [4, 32], strides = [1, 1]} : vector<4x96xf32> to vector<4x32xf32>
    %101 = arith.mulf %100, %65 : vector<4x32xf32>
    %102 = vector.extract_strided_slice %97 {offsets = [0, 0], sizes = [4, 32], strides = [1, 1]} : vector<4x96xf32> to vector<4x32xf32>
    %103 = arith.mulf %102, %99 : vector<4x32xf32>
    %104 = arith.addf %101, %103 : vector<4x32xf32>
    %105 = vector.extract_strided_slice %97 {offsets = [0, 64], sizes = [4, 32], strides = [1, 1]} : vector<4x96xf32> to vector<4x32xf32>
    %106 = math.tanh %104 : vector<4x32xf32>
    %107 = arith.mulf %105, %106 : vector<4x32xf32>
    %108 = tpu.concatenate %107, %88 in 1 : vector<4x32xf32>, vector<4x32xf32> -> vector<4x64xf32>
    %cst_32 = arith.constant dense<0.000000e+00> : vector<4x128xf32>
    %109 = tpu.matmul %108, %47, %cst_32 {dimension_numbers = #tpu.dot_dimension_numbers<[1], [0], [0], [1], [0, 0, 1, 1], [], []>} : vector<4x64xf32>, vector<64x128xf32>, vector<4x128xf32> -> vector<4x128xf32>
    %110 = vector.broadcast %48 : vector<1x128xf32> to vector<4x128xf32>
    %111 = arith.addf %109, %110 : vector<4x128xf32>
    %112 = vector.extract_strided_slice %111 {offsets = [0, 0], sizes = [4, 96], strides = [1, 1]} : vector<4x128xf32> to vector<4x96xf32>
    %113 = arith.negf %112 : vector<4x96xf32>
    %114 = math.exp %113 : vector<4x96xf32>
    %cst_33 = arith.constant 1.000000e+00 : f32
    %115 = vector.broadcast %cst_33 : f32 to vector<4x96xf32>
    %116 = arith.addf %115, %114 : vector<4x96xf32>
    %117 = arith.divf %115, %116 : vector<4x96xf32>
    %118 = vector.extract_strided_slice %111 {offsets = [0, 96], sizes = [4, 32], strides = [1, 1]} : vector<4x128xf32> to vector<4x32xf32>
    %119 = math.tanh %118 : vector<4x32xf32>
    %120 = vector.extract_strided_slice %117 {offsets = [0, 32], sizes = [4, 32], strides = [1, 1]} : vector<4x96xf32> to vector<4x32xf32>
    %121 = arith.mulf %120, %85 : vector<4x32xf32>
    %122 = vector.extract_strided_slice %117 {offsets = [0, 0], sizes = [4, 32], strides = [1, 1]} : vector<4x96xf32> to vector<4x32xf32>
    %123 = arith.mulf %122, %119 : vector<4x32xf32>
    %124 = arith.addf %121, %123 : vector<4x32xf32>
    %125 = vector.extract_strided_slice %117 {offsets = [0, 64], sizes = [4, 32], strides = [1, 1]} : vector<4x96xf32> to vector<4x32xf32>
    %126 = math.tanh %124 : vector<4x32xf32>
    %127 = arith.mulf %125, %126 : vector<4x32xf32>
    %128 = vector.extract_strided_slice %45 {offsets = [8, 0], sizes = [4, 128], strides = [1, 1]} : vector<24x128xf32> to vector<4x128xf32>
    %cst_34 = arith.constant dense<0.000000e+00> : vector<4x128xf32>
    %129 = tpu.matmul %107, %46, %cst_34 {dimension_numbers = #tpu.dot_dimension_numbers<[1], [0], [0], [1], [0, 0, 1, 1], [], []>} : vector<4x32xf32>, vector<32x128xf32>, vector<4x128xf32> -> vector<4x128xf32>
    %130 = arith.addf %128, %129 : vector<4x128xf32>
    %131 = vector.extract_strided_slice %130 {offsets = [0, 0], sizes = [4, 96], strides = [1, 1]} : vector<4x128xf32> to vector<4x96xf32>
    %132 = arith.negf %131 : vector<4x96xf32>
    %133 = math.exp %132 : vector<4x96xf32>
    %cst_35 = arith.constant 1.000000e+00 : f32
    %134 = vector.broadcast %cst_35 : f32 to vector<4x96xf32>
    %135 = arith.addf %134, %133 : vector<4x96xf32>
    %136 = arith.divf %134, %135 : vector<4x96xf32>
    %137 = vector.extract_strided_slice %130 {offsets = [0, 96], sizes = [4, 32], strides = [1, 1]} : vector<4x128xf32> to vector<4x32xf32>
    %138 = math.tanh %137 : vector<4x32xf32>
    %139 = vector.extract_strided_slice %136 {offsets = [0, 32], sizes = [4, 32], strides = [1, 1]} : vector<4x96xf32> to vector<4x32xf32>
    %140 = arith.mulf %139, %104 : vector<4x32xf32>
    %141 = vector.extract_strided_slice %136 {offsets = [0, 0], sizes = [4, 32], strides = [1, 1]} : vector<4x96xf32> to vector<4x32xf32>
    %142 = arith.mulf %141, %138 : vector<4x32xf32>
    %143 = arith.addf %140, %142 : vector<4x32xf32>
    %144 = vector.extract_strided_slice %136 {offsets = [0, 64], sizes = [4, 32], strides = [1, 1]} : vector<4x96xf32> to vector<4x32xf32>
    %145 = math.tanh %143 : vector<4x32xf32>
    %146 = arith.mulf %144, %145 : vector<4x32xf32>
    %147 = tpu.concatenate %146, %127 in 1 : vector<4x32xf32>, vector<4x32xf32> -> vector<4x64xf32>
    %cst_36 = arith.constant dense<0.000000e+00> : vector<4x128xf32>
    %148 = tpu.matmul %147, %47, %cst_36 {dimension_numbers = #tpu.dot_dimension_numbers<[1], [0], [0], [1], [0, 0, 1, 1], [], []>} : vector<4x64xf32>, vector<64x128xf32>, vector<4x128xf32> -> vector<4x128xf32>
    %149 = vector.broadcast %48 : vector<1x128xf32> to vector<4x128xf32>
    %150 = arith.addf %148, %149 : vector<4x128xf32>
    %151 = vector.extract_strided_slice %150 {offsets = [0, 0], sizes = [4, 96], strides = [1, 1]} : vector<4x128xf32> to vector<4x96xf32>
    %152 = arith.negf %151 : vector<4x96xf32>
    %153 = math.exp %152 : vector<4x96xf32>
    %cst_37 = arith.constant 1.000000e+00 : f32
    %154 = vector.broadcast %cst_37 : f32 to vector<4x96xf32>
    %155 = arith.addf %154, %153 : vector<4x96xf32>
    %156 = arith.divf %154, %155 : vector<4x96xf32>
    %157 = vector.extract_strided_slice %150 {offsets = [0, 96], sizes = [4, 32], strides = [1, 1]} : vector<4x128xf32> to vector<4x32xf32>
    %158 = math.tanh %157 : vector<4x32xf32>
    %159 = vector.extract_strided_slice %156 {offsets = [0, 32], sizes = [4, 32], strides = [1, 1]} : vector<4x96xf32> to vector<4x32xf32>
    %160 = arith.mulf %159, %124 : vector<4x32xf32>
    %161 = vector.extract_strided_slice %156 {offsets = [0, 0], sizes = [4, 32], strides = [1, 1]} : vector<4x96xf32> to vector<4x32xf32>
    %162 = arith.mulf %161, %158 : vector<4x32xf32>
    %163 = arith.addf %160, %162 : vector<4x32xf32>
    %164 = vector.extract_strided_slice %156 {offsets = [0, 64], sizes = [4, 32], strides = [1, 1]} : vector<4x96xf32> to vector<4x32xf32>
    %165 = math.tanh %163 : vector<4x32xf32>
    %166 = arith.mulf %164, %165 : vector<4x32xf32>
    %167 = vector.extract_strided_slice %45 {offsets = [12, 0], sizes = [4, 128], strides = [1, 1]} : vector<24x128xf32> to vector<4x128xf32>
    %cst_38 = arith.constant dense<0.000000e+00> : vector<4x128xf32>
    %168 = tpu.matmul %146, %46, %cst_38 {dimension_numbers = #tpu.dot_dimension_numbers<[1], [0], [0], [1], [0, 0, 1, 1], [], []>} : vector<4x32xf32>, vector<32x128xf32>, vector<4x128xf32> -> vector<4x128xf32>
    %169 = arith.addf %167, %168 : vector<4x128xf32>
    %170 = vector.extract_strided_slice %169 {offsets = [0, 0], sizes = [4, 96], strides = [1, 1]} : vector<4x128xf32> to vector<4x96xf32>
    %171 = arith.negf %170 : vector<4x96xf32>
    %172 = math.exp %171 : vector<4x96xf32>
    %cst_39 = arith.constant 1.000000e+00 : f32
    %173 = vector.broadcast %cst_39 : f32 to vector<4x96xf32>
    %174 = arith.addf %173, %172 : vector<4x96xf32>
    %175 = arith.divf %173, %174 : vector<4x96xf32>
    %176 = vector.extract_strided_slice %169 {offsets = [0, 96], sizes = [4, 32], strides = [1, 1]} : vector<4x128xf32> to vector<4x32xf32>
    %177 = math.tanh %176 : vector<4x32xf32>
    %178 = vector.extract_strided_slice %175 {offsets = [0, 32], sizes = [4, 32], strides = [1, 1]} : vector<4x96xf32> to vector<4x32xf32>
    %179 = arith.mulf %178, %143 : vector<4x32xf32>
    %180 = vector.extract_strided_slice %175 {offsets = [0, 0], sizes = [4, 32], strides = [1, 1]} : vector<4x96xf32> to vector<4x32xf32>
    %181 = arith.mulf %180, %177 : vector<4x32xf32>
    %182 = arith.addf %179, %181 : vector<4x32xf32>
    %183 = vector.extract_strided_slice %175 {offsets = [0, 64], sizes = [4, 32], strides = [1, 1]} : vector<4x96xf32> to vector<4x32xf32>
    %184 = math.tanh %182 : vector<4x32xf32>
    %185 = arith.mulf %183, %184 : vector<4x32xf32>
    %186 = tpu.concatenate %185, %166 in 1 : vector<4x32xf32>, vector<4x32xf32> -> vector<4x64xf32>
    %cst_40 = arith.constant dense<0.000000e+00> : vector<4x128xf32>
    %187 = tpu.matmul %186, %47, %cst_40 {dimension_numbers = #tpu.dot_dimension_numbers<[1], [0], [0], [1], [0, 0, 1, 1], [], []>} : vector<4x64xf32>, vector<64x128xf32>, vector<4x128xf32> -> vector<4x128xf32>
    %188 = vector.broadcast %48 : vector<1x128xf32> to vector<4x128xf32>
    %189 = arith.addf %187, %188 : vector<4x128xf32>
    %190 = vector.extract_strided_slice %189 {offsets = [0, 0], sizes = [4, 96], strides = [1, 1]} : vector<4x128xf32> to vector<4x96xf32>
    %191 = arith.negf %190 : vector<4x96xf32>
    %192 = math.exp %191 : vector<4x96xf32>
    %cst_41 = arith.constant 1.000000e+00 : f32
    %193 = vector.broadcast %cst_41 : f32 to vector<4x96xf32>
    %194 = arith.addf %193, %192 : vector<4x96xf32>
    %195 = arith.divf %193, %194 : vector<4x96xf32>
    %196 = vector.extract_strided_slice %189 {offsets = [0, 96], sizes = [4, 32], strides = [1, 1]} : vector<4x128xf32> to vector<4x32xf32>
    %197 = math.tanh %196 : vector<4x32xf32>
    %198 = vector.extract_strided_slice %195 {offsets = [0, 32], sizes = [4, 32], strides = [1, 1]} : vector<4x96xf32> to vector<4x32xf32>
    %199 = arith.mulf %198, %163 : vector<4x32xf32>
    %200 = vector.extract_strided_slice %195 {offsets = [0, 0], sizes = [4, 32], strides = [1, 1]} : vector<4x96xf32> to vector<4x32xf32>
    %201 = arith.mulf %200, %197 : vector<4x32xf32>
    %202 = arith.addf %199, %201 : vector<4x32xf32>
    %203 = vector.extract_strided_slice %195 {offsets = [0, 64], sizes = [4, 32], strides = [1, 1]} : vector<4x96xf32> to vector<4x32xf32>
    %204 = math.tanh %202 : vector<4x32xf32>
    %205 = arith.mulf %203, %204 : vector<4x32xf32>
    %206 = vector.extract_strided_slice %45 {offsets = [16, 0], sizes = [4, 128], strides = [1, 1]} : vector<24x128xf32> to vector<4x128xf32>
    %cst_42 = arith.constant dense<0.000000e+00> : vector<4x128xf32>
    %207 = tpu.matmul %185, %46, %cst_42 {dimension_numbers = #tpu.dot_dimension_numbers<[1], [0], [0], [1], [0, 0, 1, 1], [], []>} : vector<4x32xf32>, vector<32x128xf32>, vector<4x128xf32> -> vector<4x128xf32>
    %208 = arith.addf %206, %207 : vector<4x128xf32>
    %209 = vector.extract_strided_slice %208 {offsets = [0, 0], sizes = [4, 96], strides = [1, 1]} : vector<4x128xf32> to vector<4x96xf32>
    %210 = arith.negf %209 : vector<4x96xf32>
    %211 = math.exp %210 : vector<4x96xf32>
    %cst_43 = arith.constant 1.000000e+00 : f32
    %212 = vector.broadcast %cst_43 : f32 to vector<4x96xf32>
    %213 = arith.addf %212, %211 : vector<4x96xf32>
    %214 = arith.divf %212, %213 : vector<4x96xf32>
    %215 = vector.extract_strided_slice %208 {offsets = [0, 96], sizes = [4, 32], strides = [1, 1]} : vector<4x128xf32> to vector<4x32xf32>
    %216 = math.tanh %215 : vector<4x32xf32>
    %217 = vector.extract_strided_slice %214 {offsets = [0, 32], sizes = [4, 32], strides = [1, 1]} : vector<4x96xf32> to vector<4x32xf32>
    %218 = arith.mulf %217, %182 : vector<4x32xf32>
    %219 = vector.extract_strided_slice %214 {offsets = [0, 0], sizes = [4, 32], strides = [1, 1]} : vector<4x96xf32> to vector<4x32xf32>
    %220 = arith.mulf %219, %216 : vector<4x32xf32>
    %221 = arith.addf %218, %220 : vector<4x32xf32>
    %222 = vector.extract_strided_slice %214 {offsets = [0, 64], sizes = [4, 32], strides = [1, 1]} : vector<4x96xf32> to vector<4x32xf32>
    %223 = math.tanh %221 : vector<4x32xf32>
    %224 = arith.mulf %222, %223 : vector<4x32xf32>
    %225 = tpu.concatenate %224, %205 in 1 : vector<4x32xf32>, vector<4x32xf32> -> vector<4x64xf32>
    %cst_44 = arith.constant dense<0.000000e+00> : vector<4x128xf32>
    %226 = tpu.matmul %225, %47, %cst_44 {dimension_numbers = #tpu.dot_dimension_numbers<[1], [0], [0], [1], [0, 0, 1, 1], [], []>} : vector<4x64xf32>, vector<64x128xf32>, vector<4x128xf32> -> vector<4x128xf32>
    %227 = vector.broadcast %48 : vector<1x128xf32> to vector<4x128xf32>
    %228 = arith.addf %226, %227 : vector<4x128xf32>
    %229 = vector.extract_strided_slice %228 {offsets = [0, 0], sizes = [4, 96], strides = [1, 1]} : vector<4x128xf32> to vector<4x96xf32>
    %230 = arith.negf %229 : vector<4x96xf32>
    %231 = math.exp %230 : vector<4x96xf32>
    %cst_45 = arith.constant 1.000000e+00 : f32
    %232 = vector.broadcast %cst_45 : f32 to vector<4x96xf32>
    %233 = arith.addf %232, %231 : vector<4x96xf32>
    %234 = arith.divf %232, %233 : vector<4x96xf32>
    %235 = vector.extract_strided_slice %228 {offsets = [0, 96], sizes = [4, 32], strides = [1, 1]} : vector<4x128xf32> to vector<4x32xf32>
    %236 = math.tanh %235 : vector<4x32xf32>
    %237 = vector.extract_strided_slice %234 {offsets = [0, 32], sizes = [4, 32], strides = [1, 1]} : vector<4x96xf32> to vector<4x32xf32>
    %238 = arith.mulf %237, %202 : vector<4x32xf32>
    %239 = vector.extract_strided_slice %234 {offsets = [0, 0], sizes = [4, 32], strides = [1, 1]} : vector<4x96xf32> to vector<4x32xf32>
    %240 = arith.mulf %239, %236 : vector<4x32xf32>
    %241 = arith.addf %238, %240 : vector<4x32xf32>
    %242 = vector.extract_strided_slice %234 {offsets = [0, 64], sizes = [4, 32], strides = [1, 1]} : vector<4x96xf32> to vector<4x32xf32>
    %243 = math.tanh %241 : vector<4x32xf32>
    %244 = arith.mulf %242, %243 : vector<4x32xf32>
    %245 = vector.extract_strided_slice %45 {offsets = [20, 0], sizes = [4, 128], strides = [1, 1]} : vector<24x128xf32> to vector<4x128xf32>
    %cst_46 = arith.constant dense<0.000000e+00> : vector<4x128xf32>
    %246 = tpu.matmul %224, %46, %cst_46 {dimension_numbers = #tpu.dot_dimension_numbers<[1], [0], [0], [1], [0, 0, 1, 1], [], []>} : vector<4x32xf32>, vector<32x128xf32>, vector<4x128xf32> -> vector<4x128xf32>
    %247 = arith.addf %245, %246 : vector<4x128xf32>
    %248 = vector.extract_strided_slice %247 {offsets = [0, 0], sizes = [4, 96], strides = [1, 1]} : vector<4x128xf32> to vector<4x96xf32>
    %249 = arith.negf %248 : vector<4x96xf32>
    %250 = math.exp %249 : vector<4x96xf32>
    %cst_47 = arith.constant 1.000000e+00 : f32
    %251 = vector.broadcast %cst_47 : f32 to vector<4x96xf32>
    %252 = arith.addf %251, %250 : vector<4x96xf32>
    %253 = arith.divf %251, %252 : vector<4x96xf32>
    %254 = vector.extract_strided_slice %247 {offsets = [0, 96], sizes = [4, 32], strides = [1, 1]} : vector<4x128xf32> to vector<4x32xf32>
    %255 = math.tanh %254 : vector<4x32xf32>
    %256 = vector.extract_strided_slice %253 {offsets = [0, 32], sizes = [4, 32], strides = [1, 1]} : vector<4x96xf32> to vector<4x32xf32>
    %257 = arith.mulf %256, %221 : vector<4x32xf32>
    %258 = vector.extract_strided_slice %253 {offsets = [0, 0], sizes = [4, 32], strides = [1, 1]} : vector<4x96xf32> to vector<4x32xf32>
    %259 = arith.mulf %258, %255 : vector<4x32xf32>
    %260 = arith.addf %257, %259 : vector<4x32xf32>
    %261 = vector.extract_strided_slice %253 {offsets = [0, 64], sizes = [4, 32], strides = [1, 1]} : vector<4x96xf32> to vector<4x32xf32>
    %262 = math.tanh %260 : vector<4x32xf32>
    %263 = arith.mulf %261, %262 : vector<4x32xf32>
    %264 = tpu.concatenate %263, %244 in 1 : vector<4x32xf32>, vector<4x32xf32> -> vector<4x64xf32>
    %cst_48 = arith.constant dense<0.000000e+00> : vector<4x128xf32>
    %265 = tpu.matmul %264, %47, %cst_48 {dimension_numbers = #tpu.dot_dimension_numbers<[1], [0], [0], [1], [0, 0, 1, 1], [], []>} : vector<4x64xf32>, vector<64x128xf32>, vector<4x128xf32> -> vector<4x128xf32>
    %266 = vector.broadcast %48 : vector<1x128xf32> to vector<4x128xf32>
    %267 = arith.addf %265, %266 : vector<4x128xf32>
    %268 = vector.extract_strided_slice %267 {offsets = [0, 0], sizes = [4, 96], strides = [1, 1]} : vector<4x128xf32> to vector<4x96xf32>
    %269 = arith.negf %268 : vector<4x96xf32>
    %270 = math.exp %269 : vector<4x96xf32>
    %cst_49 = arith.constant 1.000000e+00 : f32
    %271 = vector.broadcast %cst_49 : f32 to vector<4x96xf32>
    %272 = arith.addf %271, %270 : vector<4x96xf32>
    %273 = arith.divf %271, %272 : vector<4x96xf32>
    %274 = vector.extract_strided_slice %267 {offsets = [0, 96], sizes = [4, 32], strides = [1, 1]} : vector<4x128xf32> to vector<4x32xf32>
    %275 = math.tanh %274 : vector<4x32xf32>
    %276 = vector.extract_strided_slice %273 {offsets = [0, 32], sizes = [4, 32], strides = [1, 1]} : vector<4x96xf32> to vector<4x32xf32>
    %277 = arith.mulf %276, %241 : vector<4x32xf32>
    %278 = vector.extract_strided_slice %273 {offsets = [0, 0], sizes = [4, 32], strides = [1, 1]} : vector<4x96xf32> to vector<4x32xf32>
    %279 = arith.mulf %278, %275 : vector<4x32xf32>
    %280 = arith.addf %277, %279 : vector<4x32xf32>
    %281 = vector.extract_strided_slice %273 {offsets = [0, 64], sizes = [4, 32], strides = [1, 1]} : vector<4x96xf32> to vector<4x32xf32>
    %282 = math.tanh %280 : vector<4x32xf32>
    %283 = arith.mulf %281, %282 : vector<4x32xf32>
    %c0_50 = arith.constant 0 : index
    %c0_51 = arith.constant 0 : index
    %284 = vector.load %arg1[%c0_50, %c0_51] : memref<4x8xf32, #tpu.memory_space<vmem>>, vector<4x8xf32>
    %c0_52 = arith.constant 0 : index
    %c0_53 = arith.constant 0 : index
    %285 = vector.load %arg15[%c0_52, %c0_53] : memref<8x64xf32, #tpu.memory_space<vmem>>, vector<8x64xf32>
    %cst_54 = arith.constant dense<0.000000e+00> : vector<4x64xf32>
    %286 = tpu.matmul %284, %285, %cst_54 {dimension_numbers = #tpu.dot_dimension_numbers<[1], [0], [0], [1], [0, 0, 1, 1], [], []>} : vector<4x8xf32>, vector<8x64xf32>, vector<4x64xf32> -> vector<4x64xf32>
    %c0_55 = arith.constant 0 : index
    %c0_56 = arith.constant 0 : index
    %287 = vector.load %arg16[%c0_55, %c0_56] : memref<1x64xf32, #tpu.memory_space<vmem>>, vector<1x64xf32>
    %288 = vector.broadcast %287 : vector<1x64xf32> to vector<4x64xf32>
    %289 = arith.addf %286, %288 : vector<4x64xf32>
    %c0_57 = arith.constant 0 : index
    %c0_58 = arith.constant 0 : index
    %c0_59 = arith.constant 0 : index
    %290 = vector.load %arg14[%c0_57, %c0_58, %c0_59] : memref<2x32x32xf32, #tpu.memory_space<vmem>>, vector<1x32x32xf32>
    %291 = vector.shape_cast %290 : vector<1x32x32xf32> to vector<32x32xf32>
    %cst_60 = arith.constant dense<0.000000e+00> : vector<4x32xf32>
    %292 = tpu.matmul %283, %291, %cst_60 {dimension_numbers = #tpu.dot_dimension_numbers<[1], [0], [0], [1], [0, 0, 1, 1], [], []>} : vector<4x32xf32>, vector<32x32xf32>, vector<4x32xf32> -> vector<4x32xf32>
    %293 = vector.extract_strided_slice %289 {offsets = [0, 0], sizes = [4, 32], strides = [1, 1]} : vector<4x64xf32> to vector<4x32xf32>
    %294 = arith.addf %292, %293 : vector<4x32xf32>
    %cst_61 = arith.constant 0.000000e+00 : f32
    %295 = vector.broadcast %cst_61 : f32 to vector<4x32xf32>
    %296 = arith.maximumf %294, %295 : vector<4x32xf32>
    %c1 = arith.constant 1 : index
    %c0_62 = arith.constant 0 : index
    %c0_63 = arith.constant 0 : index
    %297 = vector.load %arg14[%c1, %c0_62, %c0_63] : memref<2x32x32xf32, #tpu.memory_space<vmem>>, vector<1x32x32xf32>
    %298 = vector.shape_cast %297 : vector<1x32x32xf32> to vector<32x32xf32>
    %cst_64 = arith.constant dense<0.000000e+00> : vector<4x32xf32>
    %299 = tpu.matmul %296, %298, %cst_64 {dimension_numbers = #tpu.dot_dimension_numbers<[1], [0], [0], [1], [0, 0, 1, 1], [], []>} : vector<4x32xf32>, vector<32x32xf32>, vector<4x32xf32> -> vector<4x32xf32>
    %300 = vector.extract_strided_slice %289 {offsets = [0, 32], sizes = [4, 32], strides = [1, 1]} : vector<4x64xf32> to vector<4x32xf32>
    %301 = arith.addf %299, %300 : vector<4x32xf32>
    %cst_65 = arith.constant 0.000000e+00 : f32
    %302 = vector.broadcast %cst_65 : f32 to vector<4x32xf32>
    %303 = arith.maximumf %301, %302 : vector<4x32xf32>
    %c0_66 = arith.constant 0 : index
    %c0_67 = arith.constant 0 : index
    %304 = vector.load %arg4[%c0_66, %c0_67] : memref<32x32xf32, #tpu.memory_space<vmem>>, vector<32x32xf32>
    %305 = vector.extract_strided_slice %0 {offsets = [3, 0], sizes = [3, 32], strides = [1, 1]} : vector<9x32xf32> to vector<3x32xf32>
    %c0_68 = arith.constant 0 : index
    %c0_69 = arith.constant 0 : index
    %306 = vector.load %arg5[%c0_68, %c0_69] : memref<32x1xf32, #tpu.memory_space<vmem>>, vector<32x1xf32>
    %307 = vector.extract_strided_slice %1 {offsets = [1, 0], sizes = [1, 1], strides = [1, 1]} : vector<3x32xf32> to vector<1x1xf32>
    %cst_70 = arith.constant dense<0.000000e+00> : vector<4x32xf32>
    %308 = tpu.matmul %303, %304, %cst_70 {dimension_numbers = #tpu.dot_dimension_numbers<[1], [0], [0], [1], [0, 0, 1, 1], [], []>} : vector<4x32xf32>, vector<32x32xf32>, vector<4x32xf32> -> vector<4x32xf32>
    %309 = vector.extract_strided_slice %305 {offsets = [0, 0], sizes = [1, 32], strides = [1, 1]} : vector<3x32xf32> to vector<1x32xf32>
    %310 = vector.broadcast %309 : vector<1x32xf32> to vector<4x32xf32>
    %311 = arith.addf %308, %310 : vector<4x32xf32>
    %cst_71 = arith.constant dense<0.000000e+00> : vector<32xf32>
    %312 = vector.multi_reduction <add>, %311, %cst_71 [0] : vector<4x32xf32> to vector<32xf32>
    %313 = vector.shape_cast %312 : vector<32xf32> to vector<1x32xf32>
    %cst_72 = arith.constant 4.000000e+00 : f32
    %314 = vector.broadcast %cst_72 : f32 to vector<1x32xf32>
    %315 = arith.divf %313, %314 : vector<1x32xf32>
    %316 = vector.broadcast %315 : vector<1x32xf32> to vector<4x32xf32>
    %317 = arith.subf %311, %316 : vector<4x32xf32>
    %318 = arith.mulf %317, %317 : vector<4x32xf32>
    %cst_73 = arith.constant dense<0.000000e+00> : vector<32xf32>
    %319 = vector.multi_reduction <add>, %318, %cst_73 [0] : vector<4x32xf32> to vector<32xf32>
    %320 = vector.shape_cast %319 : vector<32xf32> to vector<1x32xf32>
    %cst_74 = arith.constant 4.000000e+00 : f32
    %321 = vector.broadcast %cst_74 : f32 to vector<1x32xf32>
    %322 = arith.divf %320, %321 : vector<1x32xf32>
    %323 = vector.broadcast %315 : vector<1x32xf32> to vector<4x32xf32>
    %324 = arith.subf %311, %323 : vector<4x32xf32>
    %cst_75 = arith.constant 9.99999974E-6 : f32
    %325 = vector.broadcast %cst_75 : f32 to vector<1x32xf32>
    %326 = arith.addf %322, %325 : vector<1x32xf32>
    %327 = math.rsqrt %326 : vector<1x32xf32>
    %328 = vector.broadcast %327 : vector<1x32xf32> to vector<4x32xf32>
    %329 = arith.mulf %324, %328 : vector<4x32xf32>
    %330 = vector.extract_strided_slice %305 {offsets = [1, 0], sizes = [1, 32], strides = [1, 1]} : vector<3x32xf32> to vector<1x32xf32>
    %331 = vector.broadcast %330 : vector<1x32xf32> to vector<4x32xf32>
    %332 = arith.mulf %329, %331 : vector<4x32xf32>
    %333 = vector.extract_strided_slice %305 {offsets = [2, 0], sizes = [1, 32], strides = [1, 1]} : vector<3x32xf32> to vector<1x32xf32>
    %334 = vector.broadcast %333 : vector<1x32xf32> to vector<4x32xf32>
    %335 = arith.addf %332, %334 : vector<4x32xf32>
    %cst_76 = arith.constant 0.000000e+00 : f32
    %336 = vector.broadcast %cst_76 : f32 to vector<4x32xf32>
    %337 = arith.maximumf %335, %336 : vector<4x32xf32>
    %cst_77 = arith.constant dense<0.000000e+00> : vector<4x1xf32>
    %338 = tpu.matmul %337, %306, %cst_77 {dimension_numbers = #tpu.dot_dimension_numbers<[1], [0], [0], [1], [0, 0, 1, 1], [], []>} : vector<4x32xf32>, vector<32x1xf32>, vector<4x1xf32> -> vector<4x1xf32>
    %339 = vector.broadcast %307 : vector<1x1xf32> to vector<4x1xf32>
    %340 = arith.addf %338, %339 : vector<4x1xf32>
    %341 = arith.negf %340 : vector<4x1xf32>
    %342 = math.exp %341 : vector<4x1xf32>
    %cst_78 = arith.constant 1.000000e+00 : f32
    %343 = vector.broadcast %cst_78 : f32 to vector<4x1xf32>
    %344 = arith.addf %343, %342 : vector<4x1xf32>
    %345 = arith.divf %343, %344 : vector<4x1xf32>
    %c0_79 = arith.constant 0 : index
    %c0_80 = arith.constant 0 : index
    %346 = vector.load %arg6[%c0_79, %c0_80] : memref<32x32xf32, #tpu.memory_space<vmem>>, vector<32x32xf32>
    %347 = vector.extract_strided_slice %0 {offsets = [6, 0], sizes = [3, 32], strides = [1, 1]} : vector<9x32xf32> to vector<3x32xf32>
    %c0_81 = arith.constant 0 : index
    %c0_82 = arith.constant 0 : index
    %348 = vector.load %arg7[%c0_81, %c0_82] : memref<32x4xf32, #tpu.memory_space<vmem>>, vector<32x4xf32>
    %349 = vector.extract_strided_slice %1 {offsets = [2, 0], sizes = [1, 4], strides = [1, 1]} : vector<3x32xf32> to vector<1x4xf32>
    %cst_83 = arith.constant dense<0.000000e+00> : vector<4x32xf32>
    %350 = tpu.matmul %303, %346, %cst_83 {dimension_numbers = #tpu.dot_dimension_numbers<[1], [0], [0], [1], [0, 0, 1, 1], [], []>} : vector<4x32xf32>, vector<32x32xf32>, vector<4x32xf32> -> vector<4x32xf32>
    %351 = vector.extract_strided_slice %347 {offsets = [0, 0], sizes = [1, 32], strides = [1, 1]} : vector<3x32xf32> to vector<1x32xf32>
    %352 = vector.broadcast %351 : vector<1x32xf32> to vector<4x32xf32>
    %353 = arith.addf %350, %352 : vector<4x32xf32>
    %cst_84 = arith.constant dense<0.000000e+00> : vector<32xf32>
    %354 = vector.multi_reduction <add>, %353, %cst_84 [0] : vector<4x32xf32> to vector<32xf32>
    %355 = vector.shape_cast %354 : vector<32xf32> to vector<1x32xf32>
    %cst_85 = arith.constant 4.000000e+00 : f32
    %356 = vector.broadcast %cst_85 : f32 to vector<1x32xf32>
    %357 = arith.divf %355, %356 : vector<1x32xf32>
    %358 = vector.broadcast %357 : vector<1x32xf32> to vector<4x32xf32>
    %359 = arith.subf %353, %358 : vector<4x32xf32>
    %360 = arith.mulf %359, %359 : vector<4x32xf32>
    %cst_86 = arith.constant dense<0.000000e+00> : vector<32xf32>
    %361 = vector.multi_reduction <add>, %360, %cst_86 [0] : vector<4x32xf32> to vector<32xf32>
    %362 = vector.shape_cast %361 : vector<32xf32> to vector<1x32xf32>
    %cst_87 = arith.constant 4.000000e+00 : f32
    %363 = vector.broadcast %cst_87 : f32 to vector<1x32xf32>
    %364 = arith.divf %362, %363 : vector<1x32xf32>
    %365 = vector.broadcast %357 : vector<1x32xf32> to vector<4x32xf32>
    %366 = arith.subf %353, %365 : vector<4x32xf32>
    %cst_88 = arith.constant 9.99999974E-6 : f32
    %367 = vector.broadcast %cst_88 : f32 to vector<1x32xf32>
    %368 = arith.addf %364, %367 : vector<1x32xf32>
    %369 = math.rsqrt %368 : vector<1x32xf32>
    %370 = vector.broadcast %369 : vector<1x32xf32> to vector<4x32xf32>
    %371 = arith.mulf %366, %370 : vector<4x32xf32>
    %372 = vector.extract_strided_slice %347 {offsets = [1, 0], sizes = [1, 32], strides = [1, 1]} : vector<3x32xf32> to vector<1x32xf32>
    %373 = vector.broadcast %372 : vector<1x32xf32> to vector<4x32xf32>
    %374 = arith.mulf %371, %373 : vector<4x32xf32>
    %375 = vector.extract_strided_slice %347 {offsets = [2, 0], sizes = [1, 32], strides = [1, 1]} : vector<3x32xf32> to vector<1x32xf32>
    %376 = vector.broadcast %375 : vector<1x32xf32> to vector<4x32xf32>
    %377 = arith.addf %374, %376 : vector<4x32xf32>
    %cst_89 = arith.constant 0.000000e+00 : f32
    %378 = vector.broadcast %cst_89 : f32 to vector<4x32xf32>
    %379 = arith.maximumf %377, %378 : vector<4x32xf32>
    %cst_90 = arith.constant dense<0.000000e+00> : vector<4x4xf32>
    %380 = tpu.matmul %379, %348, %cst_90 {dimension_numbers = #tpu.dot_dimension_numbers<[1], [0], [0], [1], [0, 0, 1, 1], [], []>} : vector<4x32xf32>, vector<32x4xf32>, vector<4x4xf32> -> vector<4x4xf32>
    %381 = vector.broadcast %349 : vector<1x4xf32> to vector<4x4xf32>
    %382 = arith.addf %380, %381 : vector<4x4xf32>
    %383 = arith.mulf %382, %382 : vector<4x4xf32>
    %cst_91 = arith.constant dense<0.000000e+00> : vector<4xf32>
    %384 = vector.multi_reduction <add>, %383, %cst_91 [1] : vector<4x4xf32> to vector<4xf32>
    %385 = vector.shape_cast %384 : vector<4xf32> to vector<4x1xf32>
    %cst_92 = arith.constant 1.000000e-24 : f32
    %386 = vector.broadcast %cst_92 : f32 to vector<4x1xf32>
    %387 = arith.maximumf %385, %386 : vector<4x1xf32>
    %388 = math.rsqrt %387 : vector<4x1xf32>
    %389 = vector.broadcast %388 : vector<4x1xf32> to vector<4x4xf32>
    %390 = arith.mulf %382, %389 : vector<4x4xf32>
    %c0_93 = arith.constant 0 : index
    %c0_94 = arith.constant 0 : index
    %391 = vector.load %arg17[%c0_93, %c0_94] : memref<4x4xf32, #tpu.memory_space<vmem>>, vector<4x4xf32>
    tpu.vector_store %arg17[%c0_93, %c0_94], %390 {strides = array<i32>} : memref<4x4xf32, #tpu.memory_space<vmem>>, vector<4x4xf32>,
    %c0_95 = arith.constant 0 : index
    %c0_96 = arith.constant 0 : index
    %392 = vector.load %arg18[%c0_95, %c0_96] : memref<4x1xf32, #tpu.memory_space<vmem>>, vector<4x1xf32>
    tpu.vector_store %arg18[%c0_95, %c0_96], %345 {strides = array<i32>} : memref<4x1xf32, #tpu.memory_space<vmem>>, vector<4x1xf32>,
    return
  }
}

</mosaic_0001>

<bundles_post_ra>
// kernel: func_forward.1
= control target key start
LH: loop header
LB: loop body
LE: loop exit
PB: predicated region body
PF: predicated region fallthrough
CT: control target
= control target key end

     0   :  { %s3694_s0 = inlined_call_operand.vmem [shape: f32[24,12], index: 0, kind: input, shape index: {}]   ;;  %s3695_s1 = inlined_call_operand.vmem [shape: f32[4,8], index: 1, kind: input, shape index: {}]   ;;  %s3696_s2 = inlined_call_operand.vmem [shape: f32[12,32], index: 2, kind: input, shape index: {}]   ;;  %s3697_s3 = inlined_call_operand.vmem [shape: f32[32,32], index: 3, kind: input, shape index: {}]   ;;  %s3698_s4 = inlined_call_operand.vmem [shape: f32[32,32], index: 4, kind: input, shape index: {}]   ;;  %s3699_s5 = inlined_call_operand.vmem [shape: f32[32,1], index: 5, kind: input, shape index: {}]   ;;  %s3700_s6 = inlined_call_operand.vmem [shape: f32[32,32], index: 6, kind: input, shape index: {}]   ;;  %s3701_s7 = inlined_call_operand.vmem [shape: f32[32,4], index: 7, kind: input, shape index: {}]   ;;  %s3702_s8 = inlined_call_operand.vmem [shape: f32[9,32], index: 8, kind: input, shape index: {}]   ;;  %s3703_s9 = inlined_call_operand.vmem [shape: f32[3,32], index: 9, kind: input, shape index: {}]   ;;  %s3704_s10 = inlined_call_operand.vmem [shape: f32[32,128], index: 10, kind: input, shape index: {}]   ;;  %s3705_s11 = inlined_call_operand.vmem [shape: f32[32,128], index: 11, kind: input, shape index: {}]   ;;  %s3706_s12 = inlined_call_operand.vmem [shape: f32[64,128], index: 12, kind: input, shape index: {}]   ;;  %s3707_s13 = inlined_call_operand.vmem [shape: f32[2,128], index: 13, kind: input, shape index: {}]   ;;  %s3708_s14 = inlined_call_operand.vmem [shape: f32[2,32,32], index: 14, kind: input, shape index: {}]   ;;  %s3709_s15 = inlined_call_operand.vmem [shape: f32[8,64], index: 15, kind: input, shape index: {}]   ;;  %s3710_s16 = inlined_call_operand.vmem [shape: f32[1,64], index: 16, kind: input, shape index: {}]   ;;  %s3711_s17 = inlined_call_operand.hbm [shape: f32[4,4], index: 17, kind: output, shape index: {0}]   ;;  %s3712_s18 = inlined_call_operand.vmem [shape: f32[4,1], index: 18, kind: output, shape index: {1}]  }
   0x1   :  { %3715 = sst [smem:[#allocation5_spill]] %s3694_s0 }
   0x2   :  { %3716 = sst [smem:[#allocation6_spill]] %s3695_s1 }
   0x3   :  { %3717 = sst [smem:[#allocation7_spill]] %s3696_s2 }
   0x4   :  { %s3718_s29 = sld [smem:[#allocation7_spill]]  ;;  %vm85_vm0 = vcmask 1043456   ;;  %v2972_v1 = vmov 0.0   ;;  %vm2973_vm1 = vmmov 0   ;;  %vm75_vm2 = vcmask 97280  }
   0x5   :  { %2532 = vmatprep.subr.mxu0 %v2972_v1  ;;  %2536 = vmatprep.mubr.msk.f32.mxu0 %vm2973_vm1, %v2972_v1  ;;  %s3719_s20 = sld [smem:[#allocation5_spill]] }
   0x6   :  { %2830 = vmatprep.subr.mxu1 %v2972_v1 }
   0xa   :  { %v66_v0 = vld [vmem:[%s3718_s29 + $0x8] sm:$0xf]  ;;  %v65_v2 = vld [vmem:[%s3718_s29] sm:$0xff] }
   0xb   :  { %2533 = vmatpush3.msk.msra.mxu0 %vm85_vm0, %v66_v0  ;;  %v62_v3 = vld [vmem:[%s3719_s20] sm:$0xff] }
   0xc   :  { %24 = vsyncpa [#allocation3], 0  ;;  %2534 = vmatprep.subr.mxu0 %v2972_v1  ;;  %2832 = vmatpush3.msk.msra.mxu1 %vm85_vm0, %v66_v0  ;;  %v64_v4 = vld [vmem:[%s3719_s20 + $0x10] sm:$0xff]  ;;  %v63_v5 = vld [vmem:[%s3719_s20 + $0x8] sm:$0xff]  ;;  %v71_v13 = vlaneseq  ;;  %vm169_vm3 = vcmask 261120   ;;  %s2975_s20 = smov 64  }
   0xd   :  { %2535 = vmatpush3.msra.mxu0 %v65_v2  ;;  %2831 = vmatprep.subr.mxu1 %v2972_v1  ;;  %v70_v6 = vld [vmem:[%s3697_s3 + $0x18] sm:$0xff]  ;;  %v69_v7 = vld [vmem:[%s3697_s3 + $0x10] sm:$0xff]  ;;  %v68_v8 = vld [vmem:[%s3697_s3 + $0x8] sm:$0xff]  ;;  %vm533_vm4 = vcmask 523264   ;;  %s3720_s23 = sld [smem:[#allocation6_spill]]  ;;  %vm1691_vm5 = vcmask 64512  }
   0xe   :  { %2537 = vmatmul.mubr.msk.f32.vlgmr.msra.gmra.mxu0 %vm75_vm2, %v62_v3  ;;  %2833 = vmatpush3.msra.mxu1 %v65_v2  ;;  %v67_v9 = vld [vmem:[%s3697_s3] sm:$0xff]  ;;  %v320_v10 = vld [vmem:[%s3704_s10 + $0x18] sm:$0xff]  ;;  %v319_v11 = vld [vmem:[%s3704_s10 + $0x10] sm:$0xff]  ;;  %v3135_v14 = vshrl.u32 %v71_v13, 7  ;;  %vm2013_vm6 = vcmask 257024   ;;  %vm2322_vm7 = vcmask 27648  }
   0xf   :  { %2539 = vmatprep.mubr.msk.f32.mxu0 %vm2973_vm1, %v2972_v1  ;;  %2542 = vmatprep.mubr.msk.f32.mxu1 %vm2973_vm1, %v2972_v1  ;;  %v318_v12 = vld [vmem:[%s3704_s10 + $0x8] sm:$0xff]  ;;  %v59_v16 = vld [vmem:[%s3702_s8] sm:$0xff]  ;;  %vm2330_vm8 = vcmask 3072   ;;  %s2977_s29 = smov [#allocation2]  }
  0x10   :  { %2543 = vmatmul.mubr.msk.f32.vlgmr.msra.gmra.mxu1 %vm75_vm2, %v64_v4  ;;  %2545 = vmatprep.subr.mxu1 %v2972_v1  ;;  %v3138_v15 = vsub.s32 0, %v3135_v14  ;;  %v3151_v58 = vsub.s32 1, %v3135_v14  ;;  %v215_v59 = vsub.s32 2, %v3135_v14  ;;  %v3175_v13 = vld [vmem:[%s3705_s11 + $0x8] sm:$0xff] }
  0x11   :  { %2553 = vmatprep.mubr.msk.f32.mxu1 %vm2973_vm1, %v2972_v1  ;;  %2562 = vmatprep.subr.mxu0 %v2972_v1 }
  0x12   :  { %2540 = vmatmul.mubr.msk.f32.gmra.mxu0 %vm75_vm2, %v63_v5  ;;  %2546 = vmatpush3.msra.mxu1 %v70_v6  ;;  %v74_v17 = vrot.slane %v59_v16, %v3138_v15  ;;  %v209_v60 = vrot.slane %v59_v16, %v3151_v58  ;;  %v216_v63 = vrot.slane %v59_v16, %v215_v59 }
  0x13   :  { %2570 = vmatprep.mubr.msk.f32.mxu0 %vm2973_vm1, %v2972_v1  ;;  %2547 = vmatprep.subr.mxu1 %v2972_v1 }
  0x14   :  { %2548 = vmatpush3.msra.mxu1 %v69_v7  ;;  %2563 = vmatpush3.msra.mxu0 %v320_v10  ;;  %v3166_v10 = vld [vmem:[%s3705_s11 + $0x10] sm:$0xff] }
  0x15   :  { %2549 = vmatprep.subr.mxu1 %v2972_v1  ;;  %2564 = vmatprep.subr.mxu0 %v2972_v1 }
  0x16   :  { %2550 = vmatpush3.msra.mxu1 %v68_v8  ;;  %2565 = vmatpush3.msra.mxu0 %v319_v11 }
  0x17   :  { %2551 = vmatprep.subr.mxu1 %v2972_v1  ;;  %2566 = vmatprep.subr.mxu0 %v2972_v1 }
  0x18   :  { %2552 = vmatpush3.msra.mxu1 %v67_v9  ;;  %2567 = vmatpush3.msra.mxu0 %v318_v12  ;;  %v3160_v9 = vld [vmem:[%s3705_s11 + $0x18] sm:$0xff] }
  0x19   :  { %2579 = vmatprep.subr.mxu1 %v2972_v1  ;;  %2568 = vmatprep.subr.mxu0 %v2972_v1 }
  0xce   :  { %v155_v18 = vpop.f32.mrf.mxu0 }
  0xcf   :  { %v156_v21 = vadd.f32 %v155_v18, %v74_v17  ;;  %v3193_v18 = vld [vmem:[%s3705_s11] sm:$0xff] }
  0xd0   :  { %v2538_v19 = vpop.f32.mrf.mxu0  ;;  %v165_v20 = vpop.f32.mrf.mxu1 }
  0xd1   :  { %v166_v22 = vadd.f32 %v165_v20, %v74_v17  ;;  %v170_v27 = vsel %vm169_vm3, %v156_v21, 0.0  ;;  %v61_v19 = vld [vmem:[%s3703_s9] sm:$0x7] }
  0xd2   :  { %v160_v23 = vpop.f32.mrf.mxu0  ;;  %v2544_v24 = vpop.f32.mrf.mxu1  ;;  %v226_v20 = vrot.slane %v61_v19, %v3138_v15 }
  0xd3   :  { %v161_v25 = vadd.f32 %v160_v23, %v74_v17  ;;  %v173_v29 = vsel %vm169_vm3, %v166_v22, 0.0  ;;  %v317_v17 = vld [vmem:[%s3704_s10] sm:$0xff] }
  0xd4   :  { %v2541_v26 = vpop.f32.mrf.mxu0  ;;  %2569 = vmatpush3.msra.mxu0 %v317_v17 }
  0xd5   :  { %v171_v28 = vsel %vm169_vm3, %v161_v25, 0.0  ;;  %2590 = vmatprep.subr.mxu0 %v2972_v1 }
  0xd6   :  { %v172_v30 = vadd.f32 %v171_v28, %v170_v27 }
  0xd8   :  { %v174_v31 = vadd.f32 %v173_v29, %v172_v30 }
  0xda   :  { %v175_v32 = vrot.slane %v174_v31, 4 }
  0xdc   :  { %v176_v33 = vadd.f32 %v175_v32, %v174_v31  ;;  %v3225_v32 = vld [vmem:[%s3707_s13] sm:$0x3]  ;;  %s2974_s13 = smov 32  }
  0xde   :  { %v177_v34 = vrot.slane %v176_v33, 2 }
  0xe0   :  { %v178_v35 = vadd.f32 %v177_v34, %v176_v33  ;;  %v324_v33 = vrot.slane %v3225_v32, %v3138_v15 }
  0xe2   :  { %v179_v36 = vrot.slane %v178_v35, 1 }
  0xe4   :  { %v180_v37 = vadd.f32 %v179_v36, %v178_v35 }
  0xe6   :  { %v182_v38 = vmul.f32 0.041666668, %v180_v37 }
  0xe8   :  { %v183_v39 = vsub.f32 %v156_v21, %v182_v38  ;;  %v184_v40 = vsub.f32 %v161_v25, %v182_v38  ;;  %v185_v41 = vsub.f32 %v166_v22, %v182_v38 }
  0xea   :  { %v186_v42 = vmul.f32 %v183_v39, %v183_v39  ;;  %v187_v43 = vmul.f32 %v184_v40, %v184_v40  ;;  %v188_v44 = vmul.f32 %v185_v41, %v185_v41 }
  0xec   :  { %v189_v45 = vsel %vm169_vm3, %v186_v42, 0.0  ;;  %v190_v46 = vsel %vm169_vm3, %v187_v43, 0.0  ;;  %v192_v48 = vsel %vm169_vm3, %v188_v44, 0.0 }
  0xed   :  { %v191_v47 = vadd.f32 %v190_v46, %v189_v45 }
  0xef   :  { %v193_v49 = vadd.f32 %v192_v48, %v191_v47 }
  0xf1   :  { %v194_v50 = vrot.slane %v193_v49, 4 }
  0xf3   :  { %v195_v51 = vadd.f32 %v194_v50, %v193_v49 }
  0xf5   :  { %v196_v52 = vrot.slane %v195_v51, 2 }
  0xf7   :  { %v197_v53 = vadd.f32 %v196_v52, %v195_v51 }
  0xf9   :  { %v198_v54 = vrot.slane %v197_v53, 1 }
  0xfb   :  { %v199_v55 = vadd.f32 %v198_v54, %v197_v53  ;;  %v3244_v53 = vld [vmem:[%s3706_s12 + $0x38] sm:$0xff]  ;;  %v3249_v54 = vld [vmem:[%s3706_s12 + $0x30] sm:$0xff] }
  0xfd   :  { %v200_v56 = vmul.f32 0.041666668, %v199_v55  ;;  %v3256_v55 = vld [vmem:[%s3706_s12 + $0x28] sm:$0xff] }
  0xff   :  { %v201_v57 = vadd.f32 1e-05, %v200_v56  ;;  %v3263_v56 = vld [vmem:[%s3706_s12 + $0x20] sm:$0xff] }
 0x101   :  { %2840 = vrsqrt.f32 %v201_v57  ;;  %v3270_v57 = vld [vmem:[%s3706_s12 + $0x18] sm:$0xff] }
 0x10e   :  { %v2841_v61 = vpop.eup %2840 }
 0x10f   :  { %v203_v62 = vmul.f32 %v2841_v61, %v183_v39  ;;  %v204_v0 = vmul.f32 %v2841_v61, %v184_v40  ;;  %v205_v2 = vmul.f32 %v2841_v61, %v185_v41 }
 0x111   :  { %v210_v3 = vmul.f32 %v209_v60, %v203_v62  ;;  %v211_v4 = vmul.f32 %v209_v60, %v204_v0  ;;  %v212_v6 = vmul.f32 %v209_v60, %v205_v2  ;;  %v3277_v60 = vld [vmem:[%s3706_s12 + $0x10] sm:$0xff]  ;;  %v3284_v62 = vld [vmem:[%s3706_s12 + $0x8] sm:$0xff] }
 0x113   :  { %v217_v5 = vadd.f32 %v216_v63, %v210_v3  ;;  %v218_v8 = vadd.f32 %v216_v63, %v211_v4  ;;  %v219_v12 = vadd.f32 %v216_v63, %v212_v6  ;;  %v3294_v63 = vld [vmem:[%s3706_s12] sm:$0xff]  ;;  %s2976_s12 = smov 96  }
 0x115   :  { %v220_v7 = vmax.f32 %v217_v5, 0.0  ;;  %v221_v11 = vmax.f32 %v218_v8, 0.0  ;;  %v222_v16 = vmax.f32 %v219_v12, 0.0  ;;  %v3332_v5 = vrot.slane %v3225_v32, %v3151_v58 }
 0x117   :  { %2554 = vmatmul.mubr.msk.f32.vlgmr.msra.gmra.mxu1 %vm169_vm3, %v220_v7 }
 0x118   :  { %2556 = vmatprep.mubr.msk.f32.mxu1 %vm2973_vm1, %v2972_v1  ;;  %2580 = vmatpush3.msra.mxu1 %v3160_v9 }
 0x119   :  { %2581 = vmatprep.subr.mxu1 %v2972_v1 }
 0x11a   :  { %2582 = vmatpush3.msra.mxu1 %v3166_v10 }
 0x11b   :  { %2557 = vmatmul.mubr.msk.f32.gmra.mxu1 %vm169_vm3, %v221_v11  ;;  %2583 = vmatprep.subr.mxu1 %v2972_v1 }
 0x11c   :  { %2559 = vmatprep.mubr.msk.f32.mxu1 %vm2973_vm1, %v2972_v1  ;;  %2584 = vmatpush3.msra.mxu1 %v3175_v13 }
 0x11d   :  { %2585 = vmatprep.subr.mxu1 %v2972_v1 }
 0x11e   :  { %2586 = vmatpush3.msra.mxu1 %v3193_v18 }
 0x11f   :  { %2560 = vmatmul.mubr.msk.f32.gmra.mxu1 %vm169_vm3, %v222_v16  ;;  %2609 = vmatprep.subr.mxu1 %v2972_v1 }
 0x120   :  { %2587 = vmatprep.mubr.msk.f32.mxu1 %vm2973_vm1, %v2972_v1 }
 0x123   :  { %2588 = vmatmul.mubr.f32.vlgmr.msra.gmra.mxu1 %v2972_v1 }
 0x124   :  { %2617 = vmatprep.mubr.msk.f32.mxu1 %vm2973_vm1, %v2972_v1  ;;  %2610 = vmatpush3.msra.mxu1 %v3160_v9 }
 0x125   :  { %2611 = vmatprep.subr.mxu1 %v2972_v1 }
 0x126   :  { %2612 = vmatpush3.msra.mxu1 %v3166_v10 }
 0x127   :  { %2613 = vmatprep.subr.mxu1 %v2972_v1 }
 0x128   :  { %2614 = vmatpush3.msra.mxu1 %v3175_v13 }
 0x129   :  { %2615 = vmatprep.subr.mxu1 %v2972_v1 }
 0x12a   :  { %2616 = vmatpush3.msra.mxu1 %v3193_v18 }
 0x12b   :  { %2620 = vmatprep.subr.mxu1 %v2972_v1 }
 0x1d7   :  { %v302_v21 = vpop.f32.mrf.mxu1 }
 0x1d8   :  { %v303_v22 = vadd.f32 %v302_v21, %v226_v20 }
 0x1d9   :  { %v2555_v23 = vpop.f32.mrf.mxu1 }
 0x1da   :  { %2571 = vmatmul.mubr.msk.f32.vlgmr.msra.gmra.mxu0 %vm169_vm3, %v303_v22 }
 0x1db   :  { %v307_v24 = vpop.f32.mrf.mxu1  ;;  %2573 = vmatprep.mubr.msk.f32.mxu0 %vm2973_vm1, %v2972_v1  ;;  %2591 = vmatpush3.msra.mxu0 %v3244_v53 }
 0x1dc   :  { %v308_v25 = vadd.f32 %v307_v24, %v226_v20  ;;  %2592 = vmatprep.subr.mxu0 %v2972_v1 }
 0x1dd   :  { %v2558_v26 = vpop.f32.mrf.mxu1  ;;  %2593 = vmatpush3.msra.mxu0 %v3249_v54 }
 0x1de   :  { %2574 = vmatmul.mubr.msk.f32.gmra.mxu0 %vm169_vm3, %v308_v25  ;;  %2594 = vmatprep.subr.mxu0 %v2972_v1 }
 0x1df   :  { %v312_v27 = vpop.f32.mrf.mxu1  ;;  %2576 = vmatprep.mubr.msk.f32.mxu0 %vm2973_vm1, %v2972_v1  ;;  %2595 = vmatpush3.msra.mxu0 %v3256_v55 }
 0x1e0   :  { %v313_v28 = vadd.f32 %v312_v27, %v226_v20  ;;  %2596 = vmatprep.subr.mxu0 %v2972_v1 }
 0x1e1   :  { %v2561_v29 = vpop.f32.mrf.mxu1  ;;  %2597 = vmatpush3.msra.mxu0 %v3263_v56 }
 0x1e2   :  { %2577 = vmatmul.mubr.msk.f32.gmra.mxu0 %vm169_vm3, %v313_v28  ;;  %2598 = vmatprep.subr.mxu0 %v2972_v1 }
 0x1e3   :  { %2606 = vmatprep.mubr.msk.f32.mxu0 %vm2973_vm1, %v2972_v1  ;;  %v495_v30 = vpop.f32.mrf.mxu1  ;;  %2599 = vmatpush3.msra.mxu0 %v3270_v57 }
 0x1e4   :  { %2600 = vmatprep.subr.mxu0 %v2972_v1 }
 0x1e5   :  { %v2589_v31 = vpop.f32.mrf.mxu1  ;;  %2601 = vmatpush3.msra.mxu0 %v3277_v60 }
 0x1e6   :  { %2602 = vmatprep.subr.mxu0 %v2972_v1 }
 0x1e7   :  { %2603 = vmatpush3.msra.mxu0 %v3284_v62 }
 0x1e8   :  { %2604 = vmatprep.subr.mxu0 %v2972_v1 }
 0x1e9   :  { %2605 = vmatpush3.msra.mxu0 %v3294_v63 }
 0x1ea   :  { %2639 = vmatprep.subr.mxu0 %v2972_v1 }
 0x29a   :  { %v400_v34 = vpop.f32.mrf.mxu0 }
 0x29b   :  { %v3229_v35 = vadd.f32 %v400_v34, %v324_v33 }
 0x29c   :  { %v2572_v36 = vpop.f32.mrf.mxu0 }
 0x29d   :  { %v499_v37 = vadd.f32 %v495_v30, %v3229_v35 }
 0x29e   :  { %v405_v38 = vpop.f32.mrf.mxu0 }
 0x29f   :  { %2842 = vtanh.f32 %v499_v37  ;;  %v3232_v39 = vadd.f32 %v405_v38, %v324_v33  ;;  %v2360_v15 = vmul.f32 -1.442695, %v499_v37 }
 0x2a0   :  { %v2575_v40 = vpop.f32.mrf.mxu0 }
 0x2a1   :  { %2844 = vpow2.f32 %v2360_v15 }
 0x2a2   :  { %v410_v41 = vpop.f32.mrf.mxu0 }
 0x2a3   :  { %v3234_v42 = vadd.f32 %v410_v41, %v324_v33 }
 0x2a4   :  { %v2578_v43 = vpop.f32.mrf.mxu0 }
 0x2ac   :  { %v2843_v44 = vpop.eup %2842 }
 0x2ad   :  { %509 = vrot.lane.b32.xlu0 %v2843_v44, %s2974_s13 }
 0x2ae   :  { %v2845_v45 = vpop.eup %2844 }
 0x2af   :  { %v503_v46 = vadd.f32 1.0, %v2845_v45 }
 0x2b1   :  { %2846 = vrcp.f32 %v503_v46 }
 0x2be   :  { %v2847_v47 = vpop.eup %2846 }
 0x2bf   :  { %v507_v50 = vmul.f32 0.0, %v2847_v47 }
 0x31f   :  { %v510_v48 = vpop.permute.xlu0 %509 }
 0x320   :  { %v512_v49 = vmul.f32 %v2847_v47, %v510_v48 }
 0x322   :  { %514 = vrot.lane.b32.xlu0 %v512_v49, %s2974_s13 }
 0x394   :  { %v515_v51 = vpop.permute.xlu0 %514 }
 0x395   :  { %v3238_v52 = vadd.f32 %v515_v51, %v507_v50 }
 0x397   :  { %2848 = vtanh.f32 %v3238_v52  ;;  %v715_v33 = vrot.slane %v3238_v52, 4 }
 0x3a4   :  { %v2849_v61 = vpop.eup %2848 }
 0x3a5   :  { %520 = vrot.lane.b32.xlu1 %v2849_v61, %s2974_s13 }
 0x417   :  { %v521_v0 = vpop.permute.xlu1 %520 }
 0x418   :  { %v523_v2 = vmul.f32 %v2847_v47, %v521_v0 }
 0x41a   :  { %525 = vrot.lane.b32.xlu1 %v523_v2, %s2975_s20 }
 0x48c   :  { %v526_v3 = vpop.permute.xlu1 %525 }
 0x48d   :  { %v528_v4 = vsel %vm169_vm3, %v526_v3, 0.0  ;;  %2618 = vmatmul.mubr.msk.f32.vlgmr.msra.gmra.mxu1 %vm169_vm3, %v526_v3 }
 0x48e   :  { %2607 = vmatmul.mubr.msk.f32.vlgmr.msra.gmra.mxu0 %vm533_vm4, %v528_v4  ;;  %2621 = vmatpush3.msra.mxu1 %v3244_v53 }
 0x48f   :  { %2622 = vmatprep.subr.mxu1 %v2972_v1  ;;  %2640 = vmatpush3.msra.mxu0 %v3160_v9 }
 0x490   :  { %2623 = vmatpush3.msra.mxu1 %v3249_v54  ;;  %2641 = vmatprep.subr.mxu0 %v2972_v1 }
 0x491   :  { %2624 = vmatprep.subr.mxu1 %v2972_v1  ;;  %2642 = vmatpush3.msra.mxu0 %v3166_v10 }
 0x492   :  { %2625 = vmatpush3.msra.mxu1 %v3256_v55  ;;  %2643 = vmatprep.subr.mxu0 %v2972_v1 }
 0x493   :  { %2626 = vmatprep.subr.mxu1 %v2972_v1  ;;  %2644 = vmatpush3.msra.mxu0 %v3175_v13 }
 0x494   :  { %2627 = vmatpush3.msra.mxu1 %v3263_v56  ;;  %2645 = vmatprep.subr.mxu0 %v2972_v1 }
 0x495   :  { %2628 = vmatprep.subr.mxu1 %v2972_v1  ;;  %2636 = vmatprep.mubr.msk.f32.mxu1 %vm2973_vm1, %v2972_v1 }
 0x496   :  { %2629 = vmatpush3.msra.mxu1 %v3270_v57  ;;  %2646 = vmatpush3.msra.mxu0 %v3193_v18 }
 0x497   :  { %2630 = vmatprep.subr.mxu1 %v2972_v1  ;;  %2647 = vmatprep.mubr.msk.f32.mxu0 %vm2973_vm1, %v2972_v1 }
 0x498   :  { %2631 = vmatpush3.msra.mxu1 %v3277_v60  ;;  %2650 = vmatprep.subr.mxu0 %v2972_v1 }
 0x499   :  { %2632 = vmatprep.subr.mxu1 %v2972_v1 }
 0x49a   :  { %2633 = vmatpush3.msra.mxu1 %v3284_v62 }
 0x49b   :  { %2634 = vmatprep.subr.mxu1 %v2972_v1 }
 0x49c   :  { %2635 = vmatpush3.msra.mxu1 %v3294_v63 }
 0x49d   :  { %2669 = vmatprep.subr.mxu1 %v2972_v1 }
 0x54d   :  { %v699_v6 = vpop.f32.mrf.mxu1 }
 0x54e   :  { %v704_v7 = vrot.slane %v699_v6, 4  ;;  %v603_v8 = vpop.f32.mrf.mxu0 }
 0x54f   :  { %v604_v11 = vadd.f32 %v603_v8, %v3332_v5  ;;  %v2619_v12 = vpop.f32.mrf.mxu1 }
 0x550   :  { %v706_v16 = vadd.f32 %v704_v7, %v3229_v35  ;;  %v2608_v17 = vpop.f32.mrf.mxu0 }
 0x551   :  { %2850 = vtanh.f32 %v604_v11  ;;  %v2362_v21 = vmul.f32 -1.442695, %v604_v11 }
 0x552   :  { %2852 = vtanh.f32 %v706_v16  ;;  %v2364_v22 = vmul.f32 -1.442695, %v706_v16 }
 0x553   :  { %2854 = vpow2.f32 %v2362_v21 }
 0x554   :  { %2856 = vpow2.f32 %v2364_v22 }
 0x55e   :  { %v2851_v19 = vpop.eup %2850 }
 0x55f   :  { %v2853_v20 = vpop.eup %2852  ;;  %616 = vrot.lane.b32.xlu0 %v2851_v19, %s2974_s13 }
 0x560   :  { %719 = vrot.lane.b32.xlu1 %v2853_v20, %s2974_s13  ;;  %v2855_v23 = vpop.eup %2854 }
 0x561   :  { %v2857_v24 = vpop.eup %2856  ;;  %v610_v25 = vadd.f32 1.0, %v2855_v23 }
 0x562   :  { %v710_v26 = vadd.f32 1.0, %v2857_v24 }
 0x563   :  { %2858 = vrcp.f32 %v610_v25 }
 0x564   :  { %2860 = vrcp.f32 %v710_v26 }
 0x570   :  { %v2859_v27 = vpop.eup %2858 }
 0x571   :  { %v2861_v29 = vpop.eup %2860  ;;  %v614_v34 = vmul.f32 0.0, %v2859_v27 }
 0x572   :  { %v717_v36 = vmul.f32 %v2861_v29, %v715_v33 }
 0x5d1   :  { %v617_v28 = vpop.permute.xlu0 %616 }
 0x5d2   :  { %v619_v30 = vmul.f32 %v2859_v27, %v617_v28  ;;  %v720_v31 = vpop.permute.xlu1 %719 }
 0x5d3   :  { %v722_v32 = vmul.f32 %v2861_v29, %v720_v31 }
 0x5d4   :  { %621 = vrot.lane.b32.xlu0 %v619_v30, %s2974_s13 }
 0x5d5   :  { %724 = vrot.lane.b32.xlu1 %v722_v32, %s2974_s13 }
 0x646   :  { %v622_v35 = vpop.permute.xlu0 %621 }
 0x647   :  { %v3341_v37 = vadd.f32 %v622_v35, %v614_v34  ;;  %v725_v38 = vpop.permute.xlu1 %724 }
 0x648   :  { %v3343_v40 = vadd.f32 %v725_v38, %v717_v36 }
 0x649   :  { %2862 = vtanh.f32 %v3341_v37 }
 0x64a   :  { %2864 = vtanh.f32 %v3343_v40  ;;  %v926_v28 = vrot.slane %v3343_v40, 4 }
 0x656   :  { %v2863_v41 = vpop.eup %2862 }
 0x657   :  { %v2865_v43 = vpop.eup %2864  ;;  %627 = vrot.lane.b32.xlu0 %v2863_v41, %s2974_s13 }
 0x658   :  { %730 = vrot.lane.b32.xlu1 %v2865_v43, %s2974_s13 }
 0x6c9   :  { %v628_v44 = vpop.permute.xlu0 %627 }
 0x6ca   :  { %v630_v15 = vmul.f32 %v2859_v27, %v628_v44  ;;  %v731_v45 = vpop.permute.xlu1 %730 }
 0x6cb   :  { %v733_v46 = vmul.f32 %v2861_v29, %v731_v45 }
 0x6cc   :  { %v739_v47 = vrot.slane %v630_v15, 4 }
 0x6cd   :  { %735 = vrot.lane.b32.xlu0 %v733_v46, %s2975_s20  ;;  %v842_v48 = vrot.slane %v733_v46, 4 }
 0x6ce   :  { %740 = vrot.lane.b32.xlu1 %v739_v47, %s2976_s12 }
 0x6d1   :  { %843 = vrot.lane.b32.xlu0 %v842_v48, %s2975_s20 }
 0x73f   :  { %v736_v49 = vpop.permute.xlu0 %735 }
 0x740   :  { %v741_v50 = vpop.permute.xlu1 %740 }
 0x741   :  { %v743_v51 = vsel %vm169_vm3, %v736_v49, %v741_v50 }
 0x742   :  { %v745_v52 = vrot.slane %v743_v51, 4 }
 0x743   :  { %v844_v61 = vpop.permute.xlu0 %843 }
 0x744   :  { %2637 = vmatmul.mubr.msk.f32.vlgmr.msra.gmra.mxu1 %vm533_vm4, %v745_v52  ;;  %2648 = vmatmul.mubr.msk.f32.vlgmr.msra.gmra.mxu0 %vm169_vm3, %v844_v61 }
 0x745   :  { %2651 = vmatpush3.msra.mxu0 %v3244_v53  ;;  %2670 = vmatpush3.msra.mxu1 %v3160_v9 }
 0x746   :  { %2652 = vmatprep.subr.mxu0 %v2972_v1  ;;  %2671 = vmatprep.subr.mxu1 %v2972_v1 }
 0x747   :  { %2653 = vmatpush3.msra.mxu0 %v3249_v54  ;;  %2672 = vmatpush3.msra.mxu1 %v3166_v10 }
 0x748   :  { %2654 = vmatprep.subr.mxu0 %v2972_v1  ;;  %2673 = vmatprep.subr.mxu1 %v2972_v1 }
 0x749   :  { %2655 = vmatpush3.msra.mxu0 %v3256_v55  ;;  %2674 = vmatpush3.msra.mxu1 %v3175_v13 }
 0x74a   :  { %2656 = vmatprep.subr.mxu0 %v2972_v1  ;;  %2675 = vmatprep.subr.mxu1 %v2972_v1 }
 0x74b   :  { %2657 = vmatpush3.msra.mxu0 %v3263_v56  ;;  %2676 = vmatpush3.msra.mxu1 %v3193_v18 }
 0x74c   :  { %2658 = vmatprep.subr.mxu0 %v2972_v1  ;;  %2677 = vmatprep.mubr.msk.f32.mxu1 %vm2973_vm1, %v2972_v1 }
 0x74d   :  { %2659 = vmatpush3.msra.mxu0 %v3270_v57  ;;  %2666 = vmatprep.mubr.msk.f32.mxu0 %vm2973_vm1, %v2972_v1 }
 0x74e   :  { %2660 = vmatprep.subr.mxu0 %v2972_v1  ;;  %2680 = vmatprep.subr.mxu1 %v2972_v1 }
 0x74f   :  { %2661 = vmatpush3.msra.mxu0 %v3277_v60 }
 0x750   :  { %2662 = vmatprep.subr.mxu0 %v2972_v1 }
 0x751   :  { %2663 = vmatpush3.msra.mxu0 %v3284_v62 }
 0x752   :  { %2664 = vmatprep.subr.mxu0 %v2972_v1 }
 0x753   :  { %2665 = vmatpush3.msra.mxu0 %v3294_v63 }
 0x754   :  { %2699 = vmatprep.subr.mxu0 %v2972_v1 }
 0x804   :  { %v814_v0 = vpop.f32.mrf.mxu1  ;;  %v913_v2 = vpop.f32.mrf.mxu0 }
 0x805   :  { %v815_v3 = vadd.f32 %v814_v0, %v3332_v5  ;;  %v917_v4 = vadd.f32 %v913_v2, %v3232_v39 }
 0x806   :  { %v2638_v6 = vpop.f32.mrf.mxu1  ;;  %v2649_v7 = vpop.f32.mrf.mxu0 }
 0x807   :  { %2866 = vtanh.f32 %v815_v3  ;;  %v2366_v12 = vmul.f32 -1.442695, %v815_v3  ;;  %v2368_v16 = vmul.f32 -1.442695, %v917_v4 }
 0x808   :  { %2868 = vtanh.f32 %v917_v4 }
 0x809   :  { %2870 = vpow2.f32 %v2366_v12 }
 0x80a   :  { %2872 = vpow2.f32 %v2368_v16 }
 0x814   :  { %v2867_v8 = vpop.eup %2866 }
 0x815   :  { %v2869_v11 = vpop.eup %2868  ;;  %827 = vrot.lane.b32.xlu1 %v2867_v8, %s2974_s13 }
 0x816   :  { %930 = vrot.lane.b32.xlu0 %v2869_v11, %s2974_s13  ;;  %v2871_v17 = vpop.eup %2870 }
 0x817   :  { %v2873_v19 = vpop.eup %2872  ;;  %v821_v20 = vadd.f32 1.0, %v2871_v17 }
 0x818   :  { %v921_v21 = vadd.f32 1.0, %v2873_v19 }
 0x819   :  { %2874 = vrcp.f32 %v821_v20 }
 0x81a   :  { %2876 = vrcp.f32 %v921_v21 }
 0x826   :  { %v2875_v22 = vpop.eup %2874 }
 0x827   :  { %v2877_v24 = vpop.eup %2876  ;;  %v825_v29 = vmul.f32 %v2875_v22, %v3341_v37 }
 0x828   :  { %v928_v30 = vmul.f32 %v2877_v24, %v926_v28 }
 0x887   :  { %v828_v23 = vpop.permute.xlu1 %827 }
 0x888   :  { %v931_v25 = vpop.permute.xlu0 %930  ;;  %v830_v26 = vmul.f32 %v2875_v22, %v828_v23 }
 0x889   :  { %v933_v27 = vmul.f32 %v2877_v24, %v931_v25 }
 0x88a   :  { %832 = vrot.lane.b32.xlu1 %v830_v26, %s2974_s13 }
 0x88b   :  { %935 = vrot.lane.b32.xlu0 %v933_v27, %s2974_s13 }
 0x8fc   :  { %v833_v31 = vpop.permute.xlu1 %832 }
 0x8fd   :  { %v936_v32 = vpop.permute.xlu0 %935  ;;  %v3391_v33 = vadd.f32 %v833_v31, %v825_v29 }
 0x8fe   :  { %v3393_v34 = vadd.f32 %v936_v32, %v928_v30 }
 0x8ff   :  { %2878 = vtanh.f32 %v3391_v33 }
 0x900   :  { %2880 = vtanh.f32 %v3393_v34  ;;  %v1135_v19 = vrot.slane %v3393_v34, 4 }
 0x90c   :  { %v2879_v35 = vpop.eup %2878 }
 0x90d   :  { %v2881_v36 = vpop.eup %2880  ;;  %838 = vrot.lane.b32.xlu1 %v2879_v35, %s2974_s13 }
 0x90e   :  { %941 = vrot.lane.b32.xlu0 %v2881_v36, %s2974_s13 }
 0x97f   :  { %v839_v38 = vpop.permute.xlu1 %838 }
 0x980   :  { %v942_v40 = vpop.permute.xlu0 %941  ;;  %v841_v37 = vmul.f32 %v2875_v22, %v839_v38 }
 0x981   :  { %v944_v41 = vmul.f32 %v2877_v24, %v942_v40 }
 0x982   :  { %950 = vrot.lane.b32.xlu0 %v841_v37, %s2976_s12 }
 0x983   :  { %946 = vrot.lane.b32.xlu1 %v944_v41, %s2975_s20 }
 0x9f4   :  { %v951_v43 = vpop.permute.xlu0 %950 }
 0x9f5   :  { %v947_v44 = vpop.permute.xlu1 %946 }
 0x9f6   :  { %v953_v15 = vsel %vm169_vm3, %v947_v44, %v951_v43  ;;  %2678 = vmatmul.mubr.msk.f32.vlgmr.msra.gmra.mxu1 %vm169_vm3, %v947_v44 }
 0x9f7   :  { %2667 = vmatmul.mubr.msk.f32.vlgmr.msra.gmra.mxu0 %vm533_vm4, %v953_v15  ;;  %2681 = vmatpush3.msra.mxu1 %v3244_v53 }
 0x9f8   :  { %2682 = vmatprep.subr.mxu1 %v2972_v1  ;;  %2700 = vmatpush3.msra.mxu0 %v3160_v9 }
 0x9f9   :  { %2683 = vmatpush3.msra.mxu1 %v3249_v54  ;;  %2701 = vmatprep.subr.mxu0 %v2972_v1 }
 0x9fa   :  { %2684 = vmatprep.subr.mxu1 %v2972_v1  ;;  %2702 = vmatpush3.msra.mxu0 %v3166_v10 }
 0x9fb   :  { %2685 = vmatpush3.msra.mxu1 %v3256_v55  ;;  %2703 = vmatprep.subr.mxu0 %v2972_v1 }
 0x9fc   :  { %2686 = vmatprep.subr.mxu1 %v2972_v1  ;;  %2704 = vmatpush3.msra.mxu0 %v3175_v13 }
 0x9fd   :  { %2687 = vmatpush3.msra.mxu1 %v3263_v56  ;;  %2705 = vmatprep.subr.mxu0 %v2972_v1 }
 0x9fe   :  { %2688 = vmatprep.subr.mxu1 %v2972_v1  ;;  %2696 = vmatprep.mubr.msk.f32.mxu1 %vm2973_vm1, %v2972_v1 }
 0x9ff   :  { %2689 = vmatpush3.msra.mxu1 %v3270_v57  ;;  %2706 = vmatpush3.msra.mxu0 %v3193_v18 }
 0xa00   :  { %2690 = vmatprep.subr.mxu1 %v2972_v1  ;;  %2707 = vmatprep.mubr.msk.f32.mxu0 %vm2973_vm1, %v2972_v1 }
 0xa01   :  { %2691 = vmatpush3.msra.mxu1 %v3277_v60  ;;  %2710 = vmatprep.subr.mxu0 %v2972_v1 }
 0xa02   :  { %2692 = vmatprep.subr.mxu1 %v2972_v1 }
 0xa03   :  { %2693 = vmatpush3.msra.mxu1 %v3284_v62 }
 0xa04   :  { %2694 = vmatprep.subr.mxu1 %v2972_v1 }
 0xa05   :  { %2695 = vmatpush3.msra.mxu1 %v3294_v63 }
 0xa06   :  { %2729 = vmatprep.subr.mxu1 %v2972_v1 }
 0xab6   :  { %v1119_v45 = vpop.f32.mrf.mxu1 }
 0xab7   :  { %v1124_v46 = vrot.slane %v1119_v45, 4  ;;  %v1023_v47 = vpop.f32.mrf.mxu0 }
 0xab8   :  { %v1024_v48 = vadd.f32 %v1023_v47, %v3332_v5  ;;  %v2679_v49 = vpop.f32.mrf.mxu1 }
 0xab9   :  { %v1126_v50 = vadd.f32 %v1124_v46, %v3232_v39  ;;  %v2668_v51 = vpop.f32.mrf.mxu0 }
 0xaba   :  { %2882 = vtanh.f32 %v1024_v48  ;;  %v2370_v0 = vmul.f32 -1.442695, %v1024_v48 }
 0xabb   :  { %2884 = vtanh.f32 %v1126_v50  ;;  %v2372_v2 = vmul.f32 -1.442695, %v1126_v50 }
 0xabc   :  { %2886 = vpow2.f32 %v2370_v0 }
 0xabd   :  { %2888 = vpow2.f32 %v2372_v2 }
 0xac7   :  { %v2883_v52 = vpop.eup %2882 }
 0xac8   :  { %v2885_v61 = vpop.eup %2884  ;;  %1036 = vrot.lane.b32.xlu1 %v2883_v52, %s2974_s13 }
 0xac9   :  { %1139 = vrot.lane.b32.xlu0 %v2885_v61, %s2974_s13  ;;  %v2887_v3 = vpop.eup %2886 }
 0xaca   :  { %v2889_v4 = vpop.eup %2888  ;;  %v1030_v6 = vadd.f32 1.0, %v2887_v3 }
 0xacb   :  { %v1130_v7 = vadd.f32 1.0, %v2889_v4 }
 0xacc   :  { %2890 = vrcp.f32 %v1030_v6 }
 0xacd   :  { %2892 = vrcp.f32 %v1130_v7 }
 0xad9   :  { %v2891_v39 = vpop.eup %2890 }
 0xada   :  { %v2893_v11 = vpop.eup %2892  ;;  %v1034_v20 = vmul.f32 %v2891_v39, %v3391_v33 }
 0xadb   :  { %v1137_v22 = vmul.f32 %v2893_v11, %v1135_v19 }
 0xb3a   :  { %v1037_v8 = vpop.permute.xlu1 %1036 }
 0xb3b   :  { %v1039_v12 = vmul.f32 %v2891_v39, %v1037_v8  ;;  %v1140_v16 = vpop.permute.xlu0 %1139 }
 0xb3c   :  { %v1142_v17 = vmul.f32 %v2893_v11, %v1140_v16 }
 0xb3d   :  { %1041 = vrot.lane.b32.xlu1 %v1039_v12, %s2974_s13 }
 0xb3e   :  { %1144 = vrot.lane.b32.xlu0 %v1142_v17, %s2974_s13 }
 0xbaf   :  { %v1042_v21 = vpop.permute.xlu1 %1041 }
 0xbb0   :  { %v3440_v23 = vadd.f32 %v1042_v21, %v1034_v20  ;;  %v1145_v24 = vpop.permute.xlu0 %1144 }
 0xbb1   :  { %v3442_v25 = vadd.f32 %v1145_v24, %v1137_v22 }
 0xbb2   :  { %2894 = vtanh.f32 %v3440_v23 }
 0xbb3   :  { %2896 = vtanh.f32 %v3442_v25  ;;  %v1346_v3 = vrot.slane %v3442_v25, 4 }
 0xbbf   :  { %v2895_v26 = vpop.eup %2894 }
 0xbc0   :  { %v2897_v27 = vpop.eup %2896  ;;  %1047 = vrot.lane.b32.xlu1 %v2895_v26, %s2974_s13 }
 0xbc1   :  { %1150 = vrot.lane.b32.xlu0 %v2897_v27, %s2974_s13 }
 0xc32   :  { %v1048_v28 = vpop.permute.xlu1 %1047 }
 0xc33   :  { %v1050_v29 = vmul.f32 %v2891_v39, %v1048_v28  ;;  %v1151_v30 = vpop.permute.xlu0 %1150 }
 0xc34   :  { %v1153_v31 = vmul.f32 %v2893_v11, %v1151_v30 }
 0xc35   :  { %v1159_v32 = vrot.slane %v1050_v29, 4 }
 0xc36   :  { %1155 = vrot.lane.b32.xlu1 %v1153_v31, %s2975_s20  ;;  %v1262_v33 = vrot.slane %v1153_v31, 4 }
 0xc37   :  { %1160 = vrot.lane.b32.xlu0 %v1159_v32, %s2976_s12 }
 0xc3a   :  { %1263 = vrot.lane.b32.xlu1 %v1262_v33, %s2975_s20 }
 0xca8   :  { %v1156_v34 = vpop.permute.xlu1 %1155 }
 0xca9   :  { %v1161_v35 = vpop.permute.xlu0 %1160 }
 0xcaa   :  { %v1163_v36 = vsel %vm169_vm3, %v1156_v34, %v1161_v35 }
 0xcab   :  { %v1165_v38 = vrot.slane %v1163_v36, 4 }
 0xcac   :  { %v1264_v40 = vpop.permute.xlu1 %1263 }
 0xcad   :  { %2697 = vmatmul.mubr.msk.f32.vlgmr.msra.gmra.mxu1 %vm533_vm4, %v1165_v38  ;;  %2708 = vmatmul.mubr.msk.f32.vlgmr.msra.gmra.mxu0 %vm169_vm3, %v1264_v40 }
 0xcae   :  { %2711 = vmatpush3.msra.mxu0 %v3244_v53  ;;  %2730 = vmatpush3.msra.mxu1 %v3160_v9 }
 0xcaf   :  { %2712 = vmatprep.subr.mxu0 %v2972_v1  ;;  %2731 = vmatprep.subr.mxu1 %v2972_v1 }
 0xcb0   :  { %2713 = vmatpush3.msra.mxu0 %v3249_v54  ;;  %2732 = vmatpush3.msra.mxu1 %v3166_v10 }
 0xcb1   :  { %2714 = vmatprep.subr.mxu0 %v2972_v1  ;;  %2733 = vmatprep.subr.mxu1 %v2972_v1 }
 0xcb2   :  { %2715 = vmatpush3.msra.mxu0 %v3256_v55  ;;  %2734 = vmatpush3.msra.mxu1 %v3175_v13 }
 0xcb3   :  { %2716 = vmatprep.subr.mxu0 %v2972_v1  ;;  %2735 = vmatprep.subr.mxu1 %v2972_v1 }
 0xcb4   :  { %2717 = vmatpush3.msra.mxu0 %v3263_v56  ;;  %2736 = vmatpush3.msra.mxu1 %v3193_v18 }
 0xcb5   :  { %2718 = vmatprep.subr.mxu0 %v2972_v1  ;;  %2737 = vmatprep.mubr.msk.f32.mxu1 %vm2973_vm1, %v2972_v1 }
 0xcb6   :  { %2719 = vmatpush3.msra.mxu0 %v3270_v57  ;;  %2726 = vmatprep.mubr.msk.f32.mxu0 %vm2973_vm1, %v2972_v1 }
 0xcb7   :  { %2720 = vmatprep.subr.mxu0 %v2972_v1  ;;  %2740 = vmatprep.subr.mxu1 %v2972_v1 }
 0xcb8   :  { %2721 = vmatpush3.msra.mxu0 %v3277_v60 }
 0xcb9   :  { %2722 = vmatprep.subr.mxu0 %v2972_v1 }
 0xcba   :  { %2723 = vmatpush3.msra.mxu0 %v3284_v62 }
 0xcbb   :  { %2724 = vmatprep.subr.mxu0 %v2972_v1 }
 0xcbc   :  { %2725 = vmatpush3.msra.mxu0 %v3294_v63 }
 0xcbd   :  { %2759 = vmatprep.subr.mxu0 %v2972_v1 }
 0xd6d   :  { %v1234_v9 = vpop.f32.mrf.mxu1  ;;  %v1333_v10 = vpop.f32.mrf.mxu0 }
 0xd6e   :  { %v1235_v13 = vadd.f32 %v1234_v9, %v3332_v5  ;;  %v1337_v18 = vadd.f32 %v1333_v10, %v3234_v42 }
 0xd6f   :  { %v2698_v37 = vpop.f32.mrf.mxu1  ;;  %v2709_v41 = vpop.f32.mrf.mxu0 }
 0xd70   :  { %2898 = vtanh.f32 %v1235_v13  ;;  %v2374_v15 = vmul.f32 -1.442695, %v1235_v13  ;;  %v2376_v45 = vmul.f32 -1.442695, %v1337_v18 }
 0xd71   :  { %2900 = vtanh.f32 %v1337_v18 }
 0xd72   :  { %2902 = vpow2.f32 %v2374_v15 }
 0xd73   :  { %2904 = vpow2.f32 %v2376_v45 }
 0xd7d   :  { %v2899_v43 = vpop.eup %2898 }
 0xd7e   :  { %v2901_v44 = vpop.eup %2900  ;;  %1247 = vrot.lane.b32.xlu0 %v2899_v43, %s2974_s13 }
 0xd7f   :  { %1350 = vrot.lane.b32.xlu1 %v2901_v44, %s2974_s13  ;;  %v2903_v46 = vpop.eup %2902 }
 0xd80   :  { %v2905_v47 = vpop.eup %2904  ;;  %v1241_v48 = vadd.f32 1.0, %v2903_v46 }
 0xd81   :  { %v1341_v49 = vadd.f32 1.0, %v2905_v47 }
 0xd82   :  { %2906 = vrcp.f32 %v1241_v48 }
 0xd83   :  { %2908 = vrcp.f32 %v1341_v49 }
 0xd8f   :  { %v2907_v50 = vpop.eup %2906 }
 0xd90   :  { %v2909_v52 = vpop.eup %2908  ;;  %v1245_v4 = vmul.f32 %v2907_v50, %v3440_v23 }
 0xd91   :  { %v1348_v6 = vmul.f32 %v2909_v52, %v1346_v3 }
 0xdf0   :  { %v1248_v51 = vpop.permute.xlu0 %1247 }
 0xdf1   :  { %v1351_v61 = vpop.permute.xlu1 %1350  ;;  %v1250_v0 = vmul.f32 %v2907_v50, %v1248_v51 }
 0xdf2   :  { %v1353_v2 = vmul.f32 %v2909_v52, %v1351_v61 }
 0xdf3   :  { %1252 = vrot.lane.b32.xlu0 %v1250_v0, %s2974_s13 }
 0xdf4   :  { %1355 = vrot.lane.b32.xlu1 %v1353_v2, %s2974_s13 }
 0xe65   :  { %v1253_v7 = vpop.permute.xlu0 %1252 }
 0xe66   :  { %v1356_v39 = vpop.permute.xlu1 %1355  ;;  %v3490_v8 = vadd.f32 %v1253_v7, %v1245_v4 }
 0xe67   :  { %v3492_v11 = vadd.f32 %v1356_v39, %v1348_v6 }
 0xe68   :  { %2910 = vtanh.f32 %v3490_v8 }
 0xe69   :  { %2912 = vtanh.f32 %v3492_v11  ;;  %v1555_v38 = vrot.slane %v3492_v11, 4 }
 0xe75   :  { %v2911_v12 = vpop.eup %2910 }
 0xe76   :  { %v2913_v16 = vpop.eup %2912  ;;  %1258 = vrot.lane.b32.xlu0 %v2911_v12, %s2974_s13 }
 0xe77   :  { %1361 = vrot.lane.b32.xlu1 %v2913_v16, %s2974_s13 }
 0xee8   :  { %v1259_v17 = vpop.permute.xlu0 %1258 }
 0xee9   :  { %v1362_v19 = vpop.permute.xlu1 %1361  ;;  %v1261_v20 = vmul.f32 %v2907_v50, %v1259_v17  ;;  %v1682_v17 = vld [vmem:[%s3720_s23] sm:$0xf] }
 0xeea   :  { %v1364_v21 = vmul.f32 %v2909_v52, %v1362_v19  ;;  %v1768_v19 = vld [vmem:[%s3708_s14 + $0x18] sm:$0xff] }
 0xeeb   :  { %1370 = vrot.lane.b32.xlu1 %v1261_v20, %s2976_s12  ;;  %v1767_v20 = vld [vmem:[%s3708_s14 + $0x10] sm:$0xff] }
 0xeec   :  { %1366 = vrot.lane.b32.xlu0 %v1364_v21, %s2975_s20  ;;  %v1766_v21 = vld [vmem:[%s3708_s14 + $0x8] sm:$0xff] }
 0xf5d   :  { %v1371_v22 = vpop.permute.xlu1 %1370 }
 0xf5e   :  { %v1367_v23 = vpop.permute.xlu0 %1366 }
 0xf5f   :  { %v1373_v24 = vsel %vm169_vm3, %v1367_v23, %v1371_v22  ;;  %2738 = vmatmul.mubr.msk.f32.vlgmr.msra.gmra.mxu1 %vm169_vm3, %v1367_v23  ;;  %v1765_v22 = vld [vmem:[%s3708_s14] sm:$0xff] }
 0xf60   :  { %2727 = vmatmul.mubr.msk.f32.vlgmr.msra.gmra.mxu0 %vm533_vm4, %v1373_v24  ;;  %2741 = vmatpush3.msra.mxu1 %v3244_v53 }
 0xf61   :  { %2742 = vmatprep.subr.mxu1 %v2972_v1  ;;  %2756 = vmatprep.mubr.msk.f32.mxu1 %vm2973_vm1, %v2972_v1 }
 0xf62   :  { %2743 = vmatpush3.msra.mxu1 %v3249_v54  ;;  %2761 = vmatprep.mubr.msk.f32.mxu0 %vm2973_vm1, %v2972_v1 }
 0xf63   :  { %2744 = vmatprep.subr.mxu1 %v2972_v1 }
 0xf64   :  { %2745 = vmatpush3.msra.mxu1 %v3256_v55 }
 0xf65   :  { %2746 = vmatprep.subr.mxu1 %v2972_v1 }
 0xf66   :  { %2747 = vmatpush3.msra.mxu1 %v3263_v56 }
 0xf67   :  { %2748 = vmatprep.subr.mxu1 %v2972_v1 }
 0xf68   :  { %2749 = vmatpush3.msra.mxu1 %v3270_v57 }
 0xf69   :  { %2750 = vmatprep.subr.mxu1 %v2972_v1 }
 0xf6a   :  { %2751 = vmatpush3.msra.mxu1 %v3277_v60 }
 0xf6b   :  { %2752 = vmatprep.subr.mxu1 %v2972_v1 }
 0xf6c   :  { %2753 = vmatpush3.msra.mxu1 %v3284_v62 }
 0xf6d   :  { %2754 = vmatprep.subr.mxu1 %v2972_v1 }
 0xf6e   :  { %2755 = vmatpush3.msra.mxu1 %v3294_v63 }
 0xf6f   :  { %2786 = vmatprep.subr.mxu1 %v2972_v1 }
0x101f   :  { %v1539_v53 = vpop.f32.mrf.mxu1 }
0x1020   :  { %v1544_v54 = vrot.slane %v1539_v53, 4  ;;  %v1443_v55 = vpop.f32.mrf.mxu0 }
0x1021   :  { %v1444_v56 = vadd.f32 %v1443_v55, %v3332_v5  ;;  %v2739_v57 = vpop.f32.mrf.mxu1 }
0x1022   :  { %v1546_v25 = vadd.f32 %v1544_v54, %v3234_v42  ;;  %v2728_v26 = vpop.f32.mrf.mxu0  ;;  %v2383_v54 = vld [vmem:[%s3710_s16] ss:$0 sm:$0xff] }
0x1023   :  { %2914 = vtanh.f32 %v1444_v56  ;;  %v2378_v62 = vmul.f32 -1.442695, %v1444_v56 }
0x1024   :  { %2916 = vtanh.f32 %v1546_v25  ;;  %v2380_v63 = vmul.f32 -1.442695, %v1546_v25  ;;  %v2389_v25 = vld [vmem:[%s3708_s14 + $0x38] sm:$0xff] }
0x1025   :  { %2918 = vpow2.f32 %v2378_v62  ;;  %v2386_v62 = vld [vmem:[%s3708_s14 + $0x20] sm:$0xff] }
0x1026   :  { %2920 = vpow2.f32 %v2380_v63  ;;  %v1931_v63 = vld [vmem:[%s3698_s4 + $0x18] sm:$0xff] }
0x1030   :  { %v2915_v60 = vpop.eup %2914 }
0x1031   :  { %v2917_v27 = vpop.eup %2916  ;;  %1456 = vrot.lane.b32.xlu0 %v2915_v60, %s2974_s13  ;;  %v2388_v60 = vld [vmem:[%s3708_s14 + $0x30] sm:$0xff] }
0x1032   :  { %1559 = vrot.lane.b32.xlu1 %v2917_v27, %s2974_s13  ;;  %v2919_v28 = vpop.eup %2918  ;;  %v2387_v27 = vld [vmem:[%s3708_s14 + $0x28] sm:$0xff] }
0x1033   :  { %v2921_v29 = vpop.eup %2920  ;;  %v1450_v30 = vadd.f32 1.0, %v2919_v28  ;;  %v1930_v28 = vld [vmem:[%s3698_s4 + $0x10] sm:$0xff] }
0x1034   :  { %v1550_v31 = vadd.f32 1.0, %v2921_v29 }
0x1035   :  { %2922 = vrcp.f32 %v1450_v30 }
0x1036   :  { %2924 = vrcp.f32 %v1550_v31 }
0x1042   :  { %v2923_v42 = vpop.eup %2922 }
0x1043   :  { %v2925_v33 = vpop.eup %2924  ;;  %v1454_v40 = vmul.f32 %v2923_v42, %v3490_v8 }
0x1044   :  { %v1557_v10 = vmul.f32 %v2925_v33, %v1555_v38 }
0x10a3   :  { %v1457_v32 = vpop.permute.xlu0 %1456 }
0x10a4   :  { %v1459_v34 = vmul.f32 %v2923_v42, %v1457_v32  ;;  %v1560_v35 = vpop.permute.xlu1 %1559  ;;  %v1929_v32 = vld [vmem:[%s3698_s4 + $0x8] sm:$0xff] }
0x10a5   :  { %v1562_v36 = vmul.f32 %v2925_v33, %v1560_v35 }
0x10a6   :  { %1461 = vrot.lane.b32.xlu0 %v1459_v34, %s2974_s13 }
0x10a7   :  { %1564 = vrot.lane.b32.xlu1 %v1562_v36, %s2974_s13 }
0x1118   :  { %v1462_v9 = vpop.permute.xlu0 %1461 }
0x1119   :  { %v1464_v13 = vadd.f32 %v1462_v9, %v1454_v40  ;;  %v1565_v18 = vpop.permute.xlu1 %1564  ;;  %v2133_v9 = vld [vmem:[%s3700_s6 + $0x18] sm:$0xff] }
0x111a   :  { %v1567_v37 = vadd.f32 %v1565_v18, %v1557_v10  ;;  %v2132_v10 = vld [vmem:[%s3700_s6 + $0x10] sm:$0xff]  ;;  %v2130_v18 = vld [vmem:[%s3700_s6] sm:$0xff] }
0x111b   :  { %2926 = vtanh.f32 %v1464_v13 }
0x111c   :  { %2928 = vtanh.f32 %v1567_v37  ;;  %v1935_v37 = vld [vmem:[%s3699_s5 + $0x18] sm:$0xff] }
0x1128   :  { %v2927_v41 = vpop.eup %2926 }
0x1129   :  { %v2929_v43 = vpop.eup %2928  ;;  %1467 = vrot.lane.b32.xlu0 %v2927_v41, %s2974_s13  ;;  %v1934_v41 = vld [vmem:[%s3699_s5 + $0x10] sm:$0xff] }
0x112a   :  { %1570 = vrot.lane.b32.xlu1 %v2929_v43, %s2974_s13  ;;  %v1933_v43 = vld [vmem:[%s3699_s5 + $0x8] sm:$0xff] }
0x119b   :  { %v1468_v44 = vpop.permute.xlu0 %1467 }
0x119c   :  { %v1470_v15 = vmul.f32 %v2923_v42, %v1468_v44  ;;  %v1571_v45 = vpop.permute.xlu1 %1570  ;;  %v1932_v44 = vld [vmem:[%s3699_s5] sm:$0xff] }
0x119d   :  { %v1573_v46 = vmul.f32 %v2925_v33, %v1571_v45  ;;  %v1928_v33 = vld [vmem:[%s3698_s4] sm:$0xff]  ;;  %s2338_s4 = sshll.u32 %s2977_s29, 4  ;;  %s2339_s4 = int_to_ptr.vmem [resolvable:$true] %s2338_s4 }
0x119e   :  { %v1579_v47 = vrot.slane %v1470_v15, 4  ;;  %v1938_v15 = vsub.s32 3, %v3135_v14  ;;  %v2948_v45 = vld [vmem:[%s3702_s8] sm:$0xff]  ;;  %s2950_s30 = scalar_lea.vmem %s2339_s4, 64  ;;  %p2955_p1 = scmp.lt.s32.totalorder %s2339_s4, %s2339_s4 }
0x119f   :  { %1575 = vrot.lane.b32.xlu0 %v1573_v46, %s2975_s20  ;;  %p2951_p0 = scmp.ne.s32.totalorder %s2339_s4, %s2950_s30  ;;  %p2956_p2 = scmp.lt.s32.totalorder %s2950_s30, %s2950_s30 }
0x11a0   :  { %1580 = vrot.lane.b32.xlu1 %v1579_v47, %s2976_s12  ;;  %v1939_v46 = vrot.slane %v2948_v45, %v1938_v15  ;;  %v2137_v15 = vld [vmem:[%s3701_s7 + $0x18] sm:$0xff] }
0x11a1   :  { %p2957_p3 = por %p2956_p2, %p2955_p1 }
0x11a3   :  { %p2958_p4 = pnand %p2957_p3, %p2951_p0 }
0x1211   :  { %v1576_v48 = vpop.permute.xlu0 %1575 }
0x1212   :  { %v1581_v49 = vpop.permute.xlu1 %1580 }
0x1213   :  { %v1583_v50 = vsel %vm169_vm3, %v1576_v48, %v1581_v49  ;;  %v2140_v49 = vsub.s32 6, %v3135_v14 }
0x1214   :  { %v1585_v51 = vrot.slane %v1583_v50, 4 }
0x1216   :  { %2757 = vmatmul.mubr.msk.f32.vlgmr.msra.gmra.mxu1 %vm533_vm4, %v1585_v51 }
0x1217   :  { %2794 = vmatprep.mubr.msk.f32.mxu1 %vm2973_vm1, %v2972_v1  ;;  %2787 = vmatpush3.msra.mxu1 %v1931_v63 }
0x1218   :  { %2788 = vmatprep.subr.mxu1 %v2972_v1 }
0x1219   :  { %2789 = vmatpush3.msra.mxu1 %v1930_v28 }
0x121a   :  { %2790 = vmatprep.subr.mxu1 %v2972_v1 }
0x121b   :  { %2791 = vmatpush3.msra.mxu1 %v1929_v32 }
0x121c   :  { %2792 = vmatprep.subr.mxu1 %v2972_v1 }
0x121d   :  { %2793 = vmatpush3.msra.mxu1 %v1928_v33 }
0x121e   :  { %2808 = vmatprep.subr.mxu1 %v2972_v1 }
0x12d6   :  { %v1654_v52 = vpop.f32.mrf.mxu1 }
0x12d7   :  { %v1655_v61 = vadd.f32 %v1654_v52, %v3332_v5  ;;  %v1683_v5 = vld [vmem:[%s3709_s15] sm:$0xff] }
0x12d8   :  { %v2758_v0 = vpop.f32.mrf.mxu1  ;;  %2760 = vmatpush3.msra.mxu0 %v1683_v5 }
0x12d9   :  { %2930 = vtanh.f32 %v1655_v61  ;;  %v2382_v3 = vmul.f32 -1.442695, %v1655_v61  ;;  %2762 = vmatmul.mubr.msk.f32.vlgmr.msra.gmra.mxu0 %vm1691_vm5, %v1682_v17  ;;  %2764 = vmatprep.subr.mxu0 %v2972_v1  ;;  %v2141_v61 = vrot.slane %v2948_v45, %v2140_v49  ;;  %v2395_v49 = vld [vmem:[%s3702_s8 + $0x8] ss:$0 sm:$0xff] }
0x12da   :  { %2765 = vmatpush3.msra.mxu0 %v1768_v19  ;;  %2772 = vmatprep.mubr.msk.f32.mxu0 %vm2973_vm1, %v2972_v1 }
0x12db   :  { %2932 = vpow2.f32 %v2382_v3  ;;  %2766 = vmatprep.subr.mxu0 %v2972_v1 }
0x12dc   :  { %2767 = vmatpush3.msra.mxu0 %v1767_v20 }
0x12dd   :  { %2768 = vmatprep.subr.mxu0 %v2972_v1 }
0x12de   :  { %2769 = vmatpush3.msra.mxu0 %v1766_v21 }
0x12df   :  { %2770 = vmatprep.subr.mxu0 %v2972_v1 }
0x12e0   :  { %2771 = vmatpush3.msra.mxu0 %v1765_v22 }
0x12e1   :  { %2775 = vmatprep.subr.mxu0 %v2972_v1 }
0x12e6   :  { %v2931_v2 = vpop.eup %2930 }
0x12e7   :  { %1667 = vrot.lane.b32.xlu0 %v2931_v2, %s2974_s13 }
0x12e8   :  { %v2933_v4 = vpop.eup %2932 }
0x12e9   :  { %v1661_v6 = vadd.f32 1.0, %v2933_v4 }
0x12eb   :  { %2934 = vrcp.f32 %v1661_v6 }
0x12f8   :  { %v2935_v7 = vpop.eup %2934 }
0x12f9   :  { %v1665_v11 = vmul.f32 %v2935_v7, %v1464_v13  ;;  %v2131_v13 = vld [vmem:[%s3700_s6 + $0x8] sm:$0xff] }
0x1359   :  { %v1668_v39 = vpop.permute.xlu0 %1667 }
0x135a   :  { %v1670_v8 = vmul.f32 %v2935_v7, %v1668_v39 }
0x135c   :  { %1672 = vrot.lane.b32.xlu1 %v1670_v8, %s2974_s13 }
0x1399   :  { %v1761_v55 = vpop.f32.mrf.mxu0 }
0x139a   :  { %v1762_v56 = vadd.f32 %v2383_v54, %v1761_v55 }
0x139b   :  { %v2763_v57 = vpop.f32.mrf.mxu0 }
0x13ce   :  { %v1673_v12 = vpop.permute.xlu1 %1672 }
0x13cf   :  { %v1675_v16 = vadd.f32 %v1673_v12, %v1665_v11 }
0x13d1   :  { %2936 = vtanh.f32 %v1675_v16 }
0x13de   :  { %v2937_v23 = vpop.eup %2936 }
0x13df   :  { %1678 = vrot.lane.b32.xlu0 %v2937_v23, %s2974_s13 }
0x13e3   :  { %1851 = vrot.lane.b32.xlu0 %v1762_v56, %s2976_s12 }
0x1451   :  { %v1679_v24 = vpop.permute.xlu0 %1678 }
0x1452   :  { %v1681_v53 = vmul.f32 %v2935_v7, %v1679_v24 }
0x1454   :  { %1770 = vrot.lane.b32.xlu1 %v1681_v53, %s2975_s20 }
0x1455   :  { %v1852_v34 = vpop.permute.xlu0 %1851 }
0x14c6   :  { %v1771_v26 = vpop.permute.xlu1 %1770 }
0x14c7   :  { %2773 = vmatmul.mubr.msk.f32.vlgmr.msra.gmra.mxu0 %vm169_vm3, %v1771_v26 }
0x14c8   :  { %2776 = vmatpush3.msra.mxu0 %v2389_v25  ;;  %2783 = vmatprep.mubr.msk.f32.mxu0 %vm2973_vm1, %v2972_v1 }
0x14c9   :  { %2777 = vmatprep.subr.mxu0 %v2972_v1 }
0x14ca   :  { %2778 = vmatpush3.msra.mxu0 %v2388_v60 }
0x14cb   :  { %2779 = vmatprep.subr.mxu0 %v2972_v1 }
0x14cc   :  { %2780 = vmatpush3.msra.mxu0 %v2387_v27 }
0x14cd   :  { %2781 = vmatprep.subr.mxu0 %v2972_v1 }
0x14ce   :  { %2782 = vmatpush3.msra.mxu0 %v2386_v62 }
0x14cf   :  { %2797 = vmatprep.subr.mxu0 %v2972_v1 }
0x1587   :  { %v1840_v29 = vpop.f32.mrf.mxu0 }
0x1588   :  { %v1841_v30 = vadd.f32 %v1840_v29, %v1762_v56 }
0x1589   :  { %v2774_v31 = vpop.f32.mrf.mxu0 }
0x158a   :  { %v1844_v42 = vmax.f32 %v1841_v30, 0.0 }
0x158c   :  { %2784 = vmatmul.mubr.msk.f32.vlgmr.msra.gmra.mxu0 %vm169_vm3, %v1844_v42 }
0x158d   :  { %2805 = vmatprep.mubr.msk.f32.mxu0 %vm2973_vm1, %v2972_v1  ;;  %2798 = vmatpush3.msra.mxu0 %v1935_v37  ;;  %v2235_v37 = vsub.s32 7, %v3135_v14 }
0x158e   :  { %2799 = vmatprep.subr.mxu0 %v2972_v1 }
0x158f   :  { %2800 = vmatpush3.msra.mxu0 %v1934_v41 }
0x1590   :  { %2801 = vmatprep.subr.mxu0 %v2972_v1 }
0x1591   :  { %2802 = vmatpush3.msra.mxu0 %v1933_v43 }
0x1592   :  { %2803 = vmatprep.subr.mxu0 %v2972_v1 }
0x1593   :  { %2804 = vmatpush3.msra.mxu0 %v1932_v44  ;;  %v2236_v44 = vrot.slane %v2948_v45, %v2235_v37 }
0x1594   :  { %2819 = vmatprep.subr.mxu0 %v2972_v1 }
0x164c   :  { %v1923_v35 = vpop.f32.mrf.mxu0 }
0x164d   :  { %v1924_v36 = vadd.f32 %v1923_v35, %v1852_v34 }
0x164e   :  { %v2785_v38 = vpop.f32.mrf.mxu0 }
0x164f   :  { %v1927_v40 = vmax.f32 %v1924_v36, 0.0  ;;  %v2038_v36 = vsub.s32 4, %v3135_v14  ;;  %v2043_v38 = vsub.s32 5, %v3135_v14 }
0x1651   :  { %2795 = vmatmul.mubr.msk.f32.vlgmr.msra.gmra.mxu1 %vm169_vm3, %v1927_v40 }
0x1652   :  { %2809 = vmatpush3.msra.mxu1 %v2133_v9  ;;  %2816 = vmatprep.mubr.msk.f32.mxu1 %vm2973_vm1, %v2972_v1 }
0x1653   :  { %2810 = vmatprep.subr.mxu1 %v2972_v1 }
0x1654   :  { %2811 = vmatpush3.msra.mxu1 %v2132_v10 }
0x1655   :  { %2812 = vmatprep.subr.mxu1 %v2972_v1 }
0x1656   :  { %2813 = vmatpush3.msra.mxu1 %v2131_v13  ;;  %v2044_v13 = vrot.slane %v2948_v45, %v2043_v38 }
0x1657   :  { %2814 = vmatprep.subr.mxu1 %v2972_v1 }
0x1658   :  { %2815 = vmatpush3.msra.mxu1 %v2130_v18 }
0x1659   :  { %2817 = vmatmul.mubr.msk.f32.vlgmr.msra.gmra.mxu1 %vm169_vm3, %v1927_v40  ;;  %v2039_v40 = vrot.slane %v2948_v45, %v2038_v36 }
0x1711   :  { %v2009_v47 = vpop.f32.mrf.mxu1 }
0x1712   :  { %v2010_v48 = vadd.f32 %v2009_v47, %v1939_v46 }
0x1713   :  { %v2796_v50 = vpop.f32.mrf.mxu1 }
0x1714   :  { %v2014_v51 = vsel %vm2013_vm6, %v2010_v48, 0.0  ;;  %v2135_v50 = vld [vmem:[%s3701_s7 + $0x8] sm:$0xff] }
0x1715   :  { %v2015_v52 = vrot.slane %v2014_v51, 4 }
0x1717   :  { %v2016_v0 = vadd.f32 %v2015_v52, %v2014_v51  ;;  %v2134_v52 = vld [vmem:[%s3701_s7] sm:$0xff] }
0x1719   :  { %v2017_v2 = vrot.slane %v2016_v0, 2  ;;  %v2208_v3 = vpop.f32.mrf.mxu1 }
0x171a   :  { %v2209_v4 = vadd.f32 %v2208_v3, %v2141_v61 }
0x171b   :  { %v2018_v6 = vadd.f32 %v2017_v2, %v2016_v0  ;;  %v2818_v7 = vpop.f32.mrf.mxu1  ;;  %v2949_v0 = vld [vmem:[%s3703_s9] sm:$0x7] }
0x171c   :  { %v2212_v39 = vsel %vm2013_vm6, %v2209_v4, 0.0  ;;  %v2050_v2 = vrot.slane %v2949_v0, %v3151_v58 }
0x171d   :  { %v2019_v8 = vrot.slane %v2018_v6, 1  ;;  %v2213_v11 = vrot.slane %v2212_v39, 4 }
0x171f   :  { %v2020_v12 = vadd.f32 %v2019_v8, %v2018_v6  ;;  %v2214_v16 = vadd.f32 %v2213_v11, %v2212_v39  ;;  %v2247_v39 = vrot.slane %v2949_v0, %v215_v59 }
0x1721   :  { %v2022_v5 = vmul.f32 0.25, %v2020_v12  ;;  %v2215_v17 = vrot.slane %v2214_v16, 2 }
0x1723   :  { %v2023_v19 = vsub.f32 %v2010_v48, %v2022_v5  ;;  %v2216_v20 = vadd.f32 %v2215_v17, %v2214_v16  ;;  %v2136_v48 = vld [vmem:[%s3701_s7 + $0x10] sm:$0xff] }
0x1725   :  { %v2024_v21 = vmul.f32 %v2023_v19, %v2023_v19  ;;  %v2217_v22 = vrot.slane %v2216_v20, 1 }
0x1727   :  { %v2025_v23 = vsel %vm2013_vm6, %v2024_v21, 0.0  ;;  %v2218_v24 = vadd.f32 %v2217_v22, %v2216_v20 }
0x1728   :  { %v2026_v53 = vrot.slane %v2025_v23, 4 }
0x1729   :  { %v2219_v54 = vmul.f32 0.25, %v2218_v24 }
0x172a   :  { %v2027_v55 = vadd.f32 %v2026_v53, %v2025_v23 }
0x172b   :  { %v2220_v56 = vsub.f32 %v2209_v4, %v2219_v54 }
0x172c   :  { %v2028_v57 = vrot.slane %v2027_v55, 2 }
0x172d   :  { %v2221_v25 = vmul.f32 %v2220_v56, %v2220_v56 }
0x172e   :  { %v2029_v26 = vadd.f32 %v2028_v57, %v2027_v55 }
0x172f   :  { %v2222_v60 = vsel %vm2013_vm6, %v2221_v25, 0.0 }
0x1730   :  { %v2030_v27 = vrot.slane %v2029_v26, 1  ;;  %v2223_v62 = vrot.slane %v2222_v60, 4 }
0x1732   :  { %v2031_v63 = vadd.f32 %v2030_v27, %v2029_v26  ;;  %v2224_v28 = vadd.f32 %v2223_v62, %v2222_v60 }
0x1734   :  { %v2032_v29 = vmul.f32 0.25, %v2031_v63  ;;  %v2225_v30 = vrot.slane %v2224_v28, 2 }
0x1736   :  { %v2033_v31 = vadd.f32 1e-05, %v2032_v29  ;;  %v2226_v42 = vadd.f32 %v2225_v30, %v2224_v28 }
0x1738   :  { %2938 = vrsqrt.f32 %v2033_v31  ;;  %v2227_v32 = vrot.slane %v2226_v42, 1 }
0x173a   :  { %v2228_v33 = vadd.f32 %v2227_v32, %v2226_v42 }
0x173c   :  { %v2229_v34 = vmul.f32 0.25, %v2228_v33 }
0x173e   :  { %v2230_v35 = vadd.f32 1e-05, %v2229_v34 }
0x1740   :  { %2940 = vrsqrt.f32 %v2230_v35 }
0x1745   :  { %v2939_v9 = vpop.eup %2938 }
0x1746   :  { %v2035_v10 = vmul.f32 %v2939_v9, %v2023_v19 }
0x1748   :  { %v2040_v18 = vmul.f32 %v2039_v40, %v2035_v10 }
0x174a   :  { %v2045_v41 = vadd.f32 %v2044_v13, %v2040_v18 }
0x174c   :  { %v2046_v43 = vmax.f32 %v2045_v41, 0.0 }
0x174d   :  { %v2941_v46 = vpop.eup %2940 }
0x174e   :  { %v2232_v47 = vmul.f32 %v2941_v46, %v2220_v56  ;;  %2806 = vmatmul.mubr.msk.f32.vlgmr.msra.gmra.mxu0 %vm169_vm3, %v2046_v43 }
0x174f   :  { %2820 = vmatpush3.msra.mxu0 %v2137_v15  ;;  %2827 = vmatprep.mubr.msk.f32.mxu0 %vm2973_vm1, %v2972_v1 }
0x1750   :  { %v2237_v45 = vmul.f32 %v2236_v44, %v2232_v47  ;;  %2821 = vmatprep.subr.mxu0 %v2972_v1 }
0x1751   :  { %2822 = vmatpush3.msra.mxu0 %v2136_v48 }
0x1752   :  { %v2242_v51 = vadd.f32 %v2395_v49, %v2237_v45  ;;  %2823 = vmatprep.subr.mxu0 %v2972_v1 }
0x1753   :  { %2824 = vmatpush3.msra.mxu0 %v2135_v50 }
0x1754   :  { %v2243_v61 = vmax.f32 %v2242_v51, 0.0  ;;  %2825 = vmatprep.subr.mxu0 %v2972_v1 }
0x1755   :  { %2826 = vmatpush3.msra.mxu0 %v2134_v52 }
0x1756   :  { %2828 = vmatmul.mubr.msk.f32.vlgmr.msra.gmra.mxu0 %vm169_vm3, %v2243_v61 }
0x180e   :  { %v2120_v3 = vpop.f32.mrf.mxu0 }
0x180f   :  { %v2121_v4 = vadd.f32 %v2120_v3, %v2050_v2 }
0x1810   :  { %v2807_v6 = vpop.f32.mrf.mxu0 }
0x1811   :  { %v2393_v7 = vmul.f32 -1.442695, %v2121_v4 }
0x1813   :  { %2942 = vpow2.f32 %v2393_v7 }
0x1816   :  { %v2317_v8 = vpop.f32.mrf.mxu0 }
0x1817   :  { %v2318_v11 = vadd.f32 %v2317_v8, %v2247_v39 }
0x1818   :  { %v2829_v1 = vpop.f32.mrf.mxu0 }
0x1819   :  { %v2321_v12 = vmul.f32 %v2318_v11, %v2318_v11 }
0x181b   :  { %v2323_v16 = vsel %vm2322_vm7, %v2321_v12, 0.0 }
0x181c   :  { %2324 = vadd.xlane.f32.xlu1 %v2323_v16 }
0x1820   :  { %v2943_v5 = vpop.eup %2942 }
0x1821   :  { %v2127_v17 = vadd.f32 1.0, %v2943_v5 }
0x1823   :  { %2944 = vrcp.f32 %v2127_v17 }
0x1830   :  { %v2945_v58 = vpop.eup %2944 }
0x1831   :  { %2331 = vst.msk [vmem:[%s3712_s18] sm:$0xf] %vm2330_vm8, %v2945_v58 }
0x18a5   :  { %v2325_v19 = vpop.xlane.xlu1 %2324 }
0x18a6   :  { %v2326_v14 = vmax.f32 %v2325_v19, 1e-24 }
0x18a8   :  { %2946 = vrsqrt.f32 %v2326_v14 }
0x18b5   :  { %v2947_v59 = vpop.eup %2946 }
0x18b6   :  { %v2328_v20 = vmul.f32 %v2947_v59, %v2318_v11 }
0x18b8   :  { %2329 = vst.msk [vmem:[#allocation2] sm:$0xf] %vm2322_vm7, %v2328_v20 }
0x18b9   :  { %2961 = shalt.err (!%p2958_p4)
}
0x18ba   :  { %2341 = dma.vmem_to_hbm [thread:$0]  %s2339_s4, 64, %s3711_s17, [#allocation3]  }
0x18bb   :  { %2970 = dma.done.wait [#allocation3], 64  }
0x18bc   :  { %2971 = vsyncadd [#allocation3], 4294967232 }
0x18bd   :  { %2349 = vsyncpa [#allocation3], 1 }

</bundles_post_ra>
